<compile_context>
chip_gen: v5e
topology: v5e:2x2
jax: 0.10.0
libtpu: 0.0.40
codegen_flags: <defaults>
</compile_context>

<pallas_src>
import jax
import jax.numpy as jnp
from jax.experimental import pallas as pl
from jax.experimental.pallas import tpu as pltpu

HIDDEN = 20
INPUT = 10
OUTPUT = 1
BATCH = 3
SEQ = 5

# ---- padded layout constants -------------------------------------------------
LANE = 128          # TPU lane width
B_PAD = 8           # batch padded to one f32 sublane tile
I_PAD = 16          # input dim padded to a sublane multiple (K of the x-proj matmul)
H_PAD = 128         # hidden K dim padded to one lane tile (K of recurrent / fc matmuls)
GBLK = LANE         # one full 128-lane block per gate
G_PAD = 4 * GBLK    # fused gate width: [ i | f | o | g ] -> 512 lanes

# Weight-slab row layout (all offsets are multiples of 8).
ROW_WIH = 0                      # (I_PAD, G_PAD)
ROW_WHH = ROW_WIH + I_PAD        # (H_PAD, G_PAD)
ROW_B = ROW_WHH + H_PAD          # bias row (1, G_PAD), block padded to 8 rows
ROW_WFC = ROW_B + 8              # (H_PAD, GBLK) at lanes [0:128)
ROW_BFC = ROW_WFC + H_PAD        # fc bias row (1, GBLK), block padded to 8 rows
SLAB_ROWS = ROW_BFC + 8          # 288


def make_kernel(seq):
    def kernel(x_ref, w_ref, out_ref):
        # Static, tile-aligned views into the single weight slab.
        wih = w_ref[ROW_WIH:ROW_WIH + I_PAD, :]            # (16, 512)
        whh = w_ref[ROW_WHH:ROW_WHH + H_PAD, :]            # (128, 512)
        b = w_ref[ROW_B:ROW_B + 1, :]                      # (1, 512)
        wfc = w_ref[ROW_WFC:ROW_WFC + H_PAD, 0:GBLK]       # (128, 128)
        bfc = w_ref[ROW_BFC:ROW_BFC + 1, 0:GBLK]           # (1, 128)

        # Hoisted input projection for ALL timesteps at once:
        # (T*8, 16) @ (16, 512) + (1, 512) -> (T*8, 512), single MXU matmul.
        xp = (jnp.dot(x_ref[...], wih, preferred_element_type=jnp.float32) + b)

        # h0 / c0 = zeros; state kept in vregs as one (8,128) tile per gate block.
        # Padded lanes (>= HIDDEN inside each block) stay exactly 0 every step:
        #   z_pad = 0 -> i/f/o_pad = 0.5, g_pad = 0 -> c_pad = 0, h_pad = 0.
        h = jnp.zeros((B_PAD, GBLK), jnp.float32)
        c = jnp.zeros((B_PAD, GBLK), jnp.float32)

        # SEQ is static -> fully unrolled loop; all slices are (8,128)-aligned.
        for t in range(seq):
            # One recurrent matmul per step: (8,128) @ (128,512), K one lane tile.
            z = xp[t * B_PAD:(t + 1) * B_PAD, :] + jnp.dot(
                h, whh, preferred_element_type=jnp.float32)          # (8, 512)

            # Gates packed as [ i | f | o | g ], each owning a 128-lane block.
            ifo = jax.nn.sigmoid(z[:, 0:3 * GBLK])                    # (8, 384)
            g_g = jnp.tanh(z[:, 3 * GBLK:4 * GBLK])                   # (8, 128)
            i_g = ifo[:, 0:GBLK]
            f_g = ifo[:, GBLK:2 * GBLK]
            o_g = ifo[:, 2 * GBLK:3 * GBLK]

            c = f_g * c + i_g * g_g
            h = o_g * jnp.tanh(c)

        # fc(last hidden state): (8,128) @ (128,128) + (1,128) -> lane-dense store.
        out_ref[...] = (jnp.dot(h, wfc, preferred_element_type=jnp.float32) + bfc)

    return kernel


def lstm_with_history_forward(x_bti, params):
    """x_bti: (batch, seq, input) float32 -> (batch, output)."""
    B, T, I = x_bti.shape
    H = HIDDEN
    O = OUTPUT
    order = ("i", "f", "o", "g")   # sigmoid gates contiguous, tanh gate last

    # --- build the single weight slab (SLAB_ROWS, 512) ------------------------
    wih_pad = jnp.zeros((I_PAD, G_PAD), jnp.float32)
    whh_pad = jnp.zeros((H_PAD, G_PAD), jnp.float32)
    b_pad = jnp.zeros((G_PAD,), jnp.float32)
    for n, g in enumerate(order):
        lo = n * GBLK
        wih_pad = wih_pad.at[:I, lo:lo + H].set(params["w_ih"][g])
        whh_pad = whh_pad.at[:H, lo:lo + H].set(params["w_hh"][g])
        b_pad = b_pad.at[lo:lo + H].set(params["b_ih"][g] + params["b_hh"][g])

    wfc_pad = jnp.zeros((H_PAD, GBLK), jnp.float32).at[:H, :O].set(params["w_fc"])
    bfc_pad = jnp.zeros((GBLK,), jnp.float32).at[:O].set(params["b_fc"][0])

    slab = jnp.zeros((SLAB_ROWS, G_PAD), jnp.float32)
    slab = slab.at[ROW_WIH:ROW_WIH + I_PAD, :].set(wih_pad)
    slab = slab.at[ROW_WHH:ROW_WHH + H_PAD, :].set(whh_pad)
    slab = slab.at[ROW_B, :].set(b_pad)
    slab = slab.at[ROW_WFC:ROW_WFC + H_PAD, 0:GBLK].set(wfc_pad)
    slab = slab.at[ROW_BFC, 0:GBLK].set(bfc_pad)

    # --- time-major x, batch padded to 8 sublanes, input padded to 16 lanes ---
    x_tbi = jnp.transpose(x_bti, (1, 0, 2))                     # (T, B, I)
    x_pad = jnp.zeros((T, B_PAD, I_PAD), jnp.float32).at[:, :B, :I].set(x_tbi)
    x_flat = x_pad.reshape(T * B_PAD, I_PAD)                    # (T*8, 16)

    vmem = pl.BlockSpec(memory_space=pltpu.MemorySpace.VMEM)
    out_pad = pl.pallas_call(
        make_kernel(T),
        out_shape=jax.ShapeDtypeStruct((B_PAD, GBLK), jnp.float32),
        in_specs=[vmem, vmem],
        out_specs=vmem,
    )(x_flat, slab)

    return out_pad[:B, :O]


def lstm_ref(x_bti, params):
    """Pure-JAX reference mirroring the PyTorch module (per-gate math)."""
    B, T, _ = x_bti.shape
    H = HIDDEN
    h = jnp.zeros((B, H), jnp.float32)
    c = jnp.zeros((B, H), jnp.float32)
    wih, whh = params["w_ih"], params["w_hh"]
    bih, bhh = params["b_ih"], params["b_hh"]
    for t in range(T):
        xt = x_bti[:, t, :]
        gate = lambda g: xt @ wih[g] + h @ whh[g] + bih[g] + bhh[g]
        i_g = jax.nn.sigmoid(gate("i"))
        f_g = jax.nn.sigmoid(gate("f"))
        g_g = jnp.tanh(gate("g"))
        o_g = jax.nn.sigmoid(gate("o"))
        c = f_g * c + i_g * g_g
        h = o_g * jnp.tanh(c)
    return h @ params["w_fc"] + params["b_fc"]


def make_params(key):
    """Deterministic params, PyTorch-style uniform(-1/sqrt(H), 1/sqrt(H)) init."""
    keys = jax.random.split(key, 19)
    bound = 1.0 / jnp.sqrt(jnp.float32(HIDDEN))
    u = lambda kk, shape: jax.random.uniform(kk, shape, jnp.float32, -bound, bound)
    gates = ("i", "f", "g", "o")
    params = {
        # PyTorch stores weight_ih_l0 as (4H, I); we keep per-gate, pre-transposed.
        "w_ih": {g: u(keys[n], (INPUT, HIDDEN)) for n, g in enumerate(gates)},
        "w_hh": {g: u(keys[4 + n], (HIDDEN, HIDDEN)) for n, g in enumerate(gates)},
        "b_ih": {g: u(keys[8 + n], (HIDDEN,)) for n, g in enumerate(gates)},
        "b_hh": {g: u(keys[12 + n], (HIDDEN,)) for n, g in enumerate(gates)},
        "w_fc": u(keys[16], (HIDDEN, OUTPUT)),          # fc.weight.T
        "b_fc": u(keys[17], (1, OUTPUT)),               # fc.bias
    }
    x = jax.random.uniform(keys[18], (BATCH, SEQ, INPUT), jnp.float32)
    return x, params


if __name__ == "__main__":
    x, params = make_params(jax.random.PRNGKey(0))

    out = lstm_with_history_forward(x, params)
    out = jax.block_until_ready(out)

    ref = lstm_ref(x, params)
    assert out.shape == (BATCH, OUTPUT)
    assert jnp.allclose(out, ref, atol=1e-5, rtol=1e-5), (out, ref)

    print("KERNEL_OK")
</pallas_src>

<mosaic_0001>
module attributes {stable_mosaic.version = 11 : i64} {
  func.func @kernel(%arg0: memref<40x16xf32, #tpu.memory_space<vmem>>, %arg1: memref<288x512xf32, #tpu.memory_space<vmem>>, %arg2: memref<8x128xf32, #tpu.memory_space<vmem>>) attributes {dimension_semantics = [], scalar_prefetch = 0 : i64, scratch_operands = 0 : i64, tpu.core_type = #tpu.core_type<tc>} {
    %c0 = arith.constant 0 : index
    %c0_0 = arith.constant 0 : index
    %0 = vector.load %arg1[%c0, %c0_0] : memref<288x512xf32, #tpu.memory_space<vmem>>, vector<16x512xf32>
    %c16 = arith.constant 16 : index
    %c0_1 = arith.constant 0 : index
    %1 = vector.load %arg1[%c16, %c0_1] : memref<288x512xf32, #tpu.memory_space<vmem>>, vector<128x512xf32>
    %c144 = arith.constant 144 : index
    %c0_2 = arith.constant 0 : index
    %2 = vector.load %arg1[%c144, %c0_2] : memref<288x512xf32, #tpu.memory_space<vmem>>, vector<1x512xf32>
    %c152 = arith.constant 152 : index
    %c0_3 = arith.constant 0 : index
    %3 = vector.load %arg1[%c152, %c0_3] : memref<288x512xf32, #tpu.memory_space<vmem>>, vector<128x128xf32>
    %c280 = arith.constant 280 : index
    %c0_4 = arith.constant 0 : index
    %4 = vector.load %arg1[%c280, %c0_4] : memref<288x512xf32, #tpu.memory_space<vmem>>, vector<1x128xf32>
    %c0_5 = arith.constant 0 : index
    %c0_6 = arith.constant 0 : index
    %5 = vector.load %arg0[%c0_5, %c0_6] : memref<40x16xf32, #tpu.memory_space<vmem>>, vector<40x16xf32>
    %cst = arith.constant dense<0.000000e+00> : vector<40x512xf32>
    %6 = tpu.matmul %5, %0, %cst {dimension_numbers = #tpu.dot_dimension_numbers<[1], [0], [0], [1], [0, 0, 1, 1], [], []>} : vector<40x16xf32>, vector<16x512xf32>, vector<40x512xf32> -> vector<40x512xf32>
    %7 = vector.broadcast %2 : vector<1x512xf32> to vector<40x512xf32>
    %8 = arith.addf %6, %7 : vector<40x512xf32>
    %cst_7 = arith.constant 0.000000e+00 : f32
    %9 = vector.broadcast %cst_7 : f32 to vector<8x128xf32>
    %cst_8 = arith.constant 0.000000e+00 : f32
    %10 = vector.broadcast %cst_8 : f32 to vector<8x128xf32>
    %11 = vector.extract_strided_slice %8 {offsets = [0, 0], sizes = [8, 512], strides = [1, 1]} : vector<40x512xf32> to vector<8x512xf32>
    %cst_9 = arith.constant dense<0.000000e+00> : vector<8x512xf32>
    %12 = tpu.matmul %9, %1, %cst_9 {dimension_numbers = #tpu.dot_dimension_numbers<[1], [0], [0], [1], [0, 0, 1, 1], [], []>} : vector<8x128xf32>, vector<128x512xf32>, vector<8x512xf32> -> vector<8x512xf32>
    %13 = arith.addf %11, %12 : vector<8x512xf32>
    %14 = vector.extract_strided_slice %13 {offsets = [0, 0], sizes = [8, 384], strides = [1, 1]} : vector<8x512xf32> to vector<8x384xf32>
    %15 = arith.negf %14 : vector<8x384xf32>
    %16 = math.exp %15 : vector<8x384xf32>
    %cst_10 = arith.constant 1.000000e+00 : f32
    %17 = vector.broadcast %cst_10 : f32 to vector<8x384xf32>
    %18 = arith.addf %17, %16 : vector<8x384xf32>
    %19 = arith.divf %17, %18 : vector<8x384xf32>
    %20 = vector.extract_strided_slice %13 {offsets = [0, 384], sizes = [8, 128], strides = [1, 1]} : vector<8x512xf32> to vector<8x128xf32>
    %21 = math.tanh %20 : vector<8x128xf32>
    %22 = vector.extract_strided_slice %19 {offsets = [0, 0], sizes = [8, 128], strides = [1, 1]} : vector<8x384xf32> to vector<8x128xf32>
    %23 = vector.extract_strided_slice %19 {offsets = [0, 128], sizes = [8, 128], strides = [1, 1]} : vector<8x384xf32> to vector<8x128xf32>
    %24 = vector.extract_strided_slice %19 {offsets = [0, 256], sizes = [8, 128], strides = [1, 1]} : vector<8x384xf32> to vector<8x128xf32>
    %25 = arith.mulf %23, %10 : vector<8x128xf32>
    %26 = arith.mulf %22, %21 : vector<8x128xf32>
    %27 = arith.addf %25, %26 : vector<8x128xf32>
    %28 = math.tanh %27 : vector<8x128xf32>
    %29 = arith.mulf %24, %28 : vector<8x128xf32>
    %30 = vector.extract_strided_slice %8 {offsets = [8, 0], sizes = [8, 512], strides = [1, 1]} : vector<40x512xf32> to vector<8x512xf32>
    %cst_11 = arith.constant dense<0.000000e+00> : vector<8x512xf32>
    %31 = tpu.matmul %29, %1, %cst_11 {dimension_numbers = #tpu.dot_dimension_numbers<[1], [0], [0], [1], [0, 0, 1, 1], [], []>} : vector<8x128xf32>, vector<128x512xf32>, vector<8x512xf32> -> vector<8x512xf32>
    %32 = arith.addf %30, %31 : vector<8x512xf32>
    %33 = vector.extract_strided_slice %32 {offsets = [0, 0], sizes = [8, 384], strides = [1, 1]} : vector<8x512xf32> to vector<8x384xf32>
    %34 = arith.negf %33 : vector<8x384xf32>
    %35 = math.exp %34 : vector<8x384xf32>
    %cst_12 = arith.constant 1.000000e+00 : f32
    %36 = vector.broadcast %cst_12 : f32 to vector<8x384xf32>
    %37 = arith.addf %36, %35 : vector<8x384xf32>
    %38 = arith.divf %36, %37 : vector<8x384xf32>
    %39 = vector.extract_strided_slice %32 {offsets = [0, 384], sizes = [8, 128], strides = [1, 1]} : vector<8x512xf32> to vector<8x128xf32>
    %40 = math.tanh %39 : vector<8x128xf32>
    %41 = vector.extract_strided_slice %38 {offsets = [0, 0], sizes = [8, 128], strides = [1, 1]} : vector<8x384xf32> to vector<8x128xf32>
    %42 = vector.extract_strided_slice %38 {offsets = [0, 128], sizes = [8, 128], strides = [1, 1]} : vector<8x384xf32> to vector<8x128xf32>
    %43 = vector.extract_strided_slice %38 {offsets = [0, 256], sizes = [8, 128], strides = [1, 1]} : vector<8x384xf32> to vector<8x128xf32>
    %44 = arith.mulf %42, %27 : vector<8x128xf32>
    %45 = arith.mulf %41, %40 : vector<8x128xf32>
    %46 = arith.addf %44, %45 : vector<8x128xf32>
    %47 = math.tanh %46 : vector<8x128xf32>
    %48 = arith.mulf %43, %47 : vector<8x128xf32>
    %49 = vector.extract_strided_slice %8 {offsets = [16, 0], sizes = [8, 512], strides = [1, 1]} : vector<40x512xf32> to vector<8x512xf32>
    %cst_13 = arith.constant dense<0.000000e+00> : vector<8x512xf32>
    %50 = tpu.matmul %48, %1, %cst_13 {dimension_numbers = #tpu.dot_dimension_numbers<[1], [0], [0], [1], [0, 0, 1, 1], [], []>} : vector<8x128xf32>, vector<128x512xf32>, vector<8x512xf32> -> vector<8x512xf32>
    %51 = arith.addf %49, %50 : vector<8x512xf32>
    %52 = vector.extract_strided_slice %51 {offsets = [0, 0], sizes = [8, 384], strides = [1, 1]} : vector<8x512xf32> to vector<8x384xf32>
    %53 = arith.negf %52 : vector<8x384xf32>
    %54 = math.exp %53 : vector<8x384xf32>
    %cst_14 = arith.constant 1.000000e+00 : f32
    %55 = vector.broadcast %cst_14 : f32 to vector<8x384xf32>
    %56 = arith.addf %55, %54 : vector<8x384xf32>
    %57 = arith.divf %55, %56 : vector<8x384xf32>
    %58 = vector.extract_strided_slice %51 {offsets = [0, 384], sizes = [8, 128], strides = [1, 1]} : vector<8x512xf32> to vector<8x128xf32>
    %59 = math.tanh %58 : vector<8x128xf32>
    %60 = vector.extract_strided_slice %57 {offsets = [0, 0], sizes = [8, 128], strides = [1, 1]} : vector<8x384xf32> to vector<8x128xf32>
    %61 = vector.extract_strided_slice %57 {offsets = [0, 128], sizes = [8, 128], strides = [1, 1]} : vector<8x384xf32> to vector<8x128xf32>
    %62 = vector.extract_strided_slice %57 {offsets = [0, 256], sizes = [8, 128], strides = [1, 1]} : vector<8x384xf32> to vector<8x128xf32>
    %63 = arith.mulf %61, %46 : vector<8x128xf32>
    %64 = arith.mulf %60, %59 : vector<8x128xf32>
    %65 = arith.addf %63, %64 : vector<8x128xf32>
    %66 = math.tanh %65 : vector<8x128xf32>
    %67 = arith.mulf %62, %66 : vector<8x128xf32>
    %68 = vector.extract_strided_slice %8 {offsets = [24, 0], sizes = [8, 512], strides = [1, 1]} : vector<40x512xf32> to vector<8x512xf32>
    %cst_15 = arith.constant dense<0.000000e+00> : vector<8x512xf32>
    %69 = tpu.matmul %67, %1, %cst_15 {dimension_numbers = #tpu.dot_dimension_numbers<[1], [0], [0], [1], [0, 0, 1, 1], [], []>} : vector<8x128xf32>, vector<128x512xf32>, vector<8x512xf32> -> vector<8x512xf32>
    %70 = arith.addf %68, %69 : vector<8x512xf32>
    %71 = vector.extract_strided_slice %70 {offsets = [0, 0], sizes = [8, 384], strides = [1, 1]} : vector<8x512xf32> to vector<8x384xf32>
    %72 = arith.negf %71 : vector<8x384xf32>
    %73 = math.exp %72 : vector<8x384xf32>
    %cst_16 = arith.constant 1.000000e+00 : f32
    %74 = vector.broadcast %cst_16 : f32 to vector<8x384xf32>
    %75 = arith.addf %74, %73 : vector<8x384xf32>
    %76 = arith.divf %74, %75 : vector<8x384xf32>
    %77 = vector.extract_strided_slice %70 {offsets = [0, 384], sizes = [8, 128], strides = [1, 1]} : vector<8x512xf32> to vector<8x128xf32>
    %78 = math.tanh %77 : vector<8x128xf32>
    %79 = vector.extract_strided_slice %76 {offsets = [0, 0], sizes = [8, 128], strides = [1, 1]} : vector<8x384xf32> to vector<8x128xf32>
    %80 = vector.extract_strided_slice %76 {offsets = [0, 128], sizes = [8, 128], strides = [1, 1]} : vector<8x384xf32> to vector<8x128xf32>
    %81 = vector.extract_strided_slice %76 {offsets = [0, 256], sizes = [8, 128], strides = [1, 1]} : vector<8x384xf32> to vector<8x128xf32>
    %82 = arith.mulf %80, %65 : vector<8x128xf32>
    %83 = arith.mulf %79, %78 : vector<8x128xf32>
    %84 = arith.addf %82, %83 : vector<8x128xf32>
    %85 = math.tanh %84 : vector<8x128xf32>
    %86 = arith.mulf %81, %85 : vector<8x128xf32>
    %87 = vector.extract_strided_slice %8 {offsets = [32, 0], sizes = [8, 512], strides = [1, 1]} : vector<40x512xf32> to vector<8x512xf32>
    %cst_17 = arith.constant dense<0.000000e+00> : vector<8x512xf32>
    %88 = tpu.matmul %86, %1, %cst_17 {dimension_numbers = #tpu.dot_dimension_numbers<[1], [0], [0], [1], [0, 0, 1, 1], [], []>} : vector<8x128xf32>, vector<128x512xf32>, vector<8x512xf32> -> vector<8x512xf32>
    %89 = arith.addf %87, %88 : vector<8x512xf32>
    %90 = vector.extract_strided_slice %89 {offsets = [0, 0], sizes = [8, 384], strides = [1, 1]} : vector<8x512xf32> to vector<8x384xf32>
    %91 = arith.negf %90 : vector<8x384xf32>
    %92 = math.exp %91 : vector<8x384xf32>
    %cst_18 = arith.constant 1.000000e+00 : f32
    %93 = vector.broadcast %cst_18 : f32 to vector<8x384xf32>
    %94 = arith.addf %93, %92 : vector<8x384xf32>
    %95 = arith.divf %93, %94 : vector<8x384xf32>
    %96 = vector.extract_strided_slice %89 {offsets = [0, 384], sizes = [8, 128], strides = [1, 1]} : vector<8x512xf32> to vector<8x128xf32>
    %97 = math.tanh %96 : vector<8x128xf32>
    %98 = vector.extract_strided_slice %95 {offsets = [0, 0], sizes = [8, 128], strides = [1, 1]} : vector<8x384xf32> to vector<8x128xf32>
    %99 = vector.extract_strided_slice %95 {offsets = [0, 128], sizes = [8, 128], strides = [1, 1]} : vector<8x384xf32> to vector<8x128xf32>
    %100 = vector.extract_strided_slice %95 {offsets = [0, 256], sizes = [8, 128], strides = [1, 1]} : vector<8x384xf32> to vector<8x128xf32>
    %101 = arith.mulf %99, %84 : vector<8x128xf32>
    %102 = arith.mulf %98, %97 : vector<8x128xf32>
    %103 = arith.addf %101, %102 : vector<8x128xf32>
    %104 = math.tanh %103 : vector<8x128xf32>
    %105 = arith.mulf %100, %104 : vector<8x128xf32>
    %cst_19 = arith.constant dense<0.000000e+00> : vector<8x128xf32>
    %106 = tpu.matmul %105, %3, %cst_19 {dimension_numbers = #tpu.dot_dimension_numbers<[1], [0], [0], [1], [0, 0, 1, 1], [], []>} : vector<8x128xf32>, vector<128x128xf32>, vector<8x128xf32> -> vector<8x128xf32>
    %107 = vector.broadcast %4 : vector<1x128xf32> to vector<8x128xf32>
    %108 = arith.addf %106, %107 : vector<8x128xf32>
    %c0_20 = arith.constant 0 : index
    %c0_21 = arith.constant 0 : index
    %109 = vector.load %arg2[%c0_20, %c0_21] : memref<8x128xf32, #tpu.memory_space<vmem>>, vector<8x128xf32>
    tpu.vector_store %arg2[%c0_20, %c0_21], %108 {strides = array<i32>} : memref<8x128xf32, #tpu.memory_space<vmem>>, vector<8x128xf32>,
    return
  }
}

</mosaic_0001>

<bundles_post_ra>
// kernel: tpu_custom_call.1
= control target key start
LH: loop header
LB: loop body
LE: loop exit
PB: predicated region body
PF: predicated region fallthrough
CT: control target
= control target key end

     0   :  { %7 = vsyncpa [#allocation3], 0  ;;  %s1806_s0 = inlined_call_operand.vmem [shape: f32[40,16], index: 0, kind: input, shape index: {}]   ;;  %s1807_s1 = inlined_call_operand.hbm [shape: f32[288,512], index: 1, kind: input, shape index: {}]   ;;  %s1808_s2 = inlined_call_operand.hbm [shape: f32[8,128], index: 2, kind: output, shape index: {}]  }
   0x1   :  { %8 = vsyncpa [#allocation4], 0  ;;  %s15_s11 = sshll.u32 %s1807_s1, 4  ;;  %s1251_s12 = smov [#allocation2]   ;;  %s16_s11 = int_to_ptr.hbm [resolvable:$true] %s15_s11 }
   0x2   :  { %s17_s13 = sshll.u32 %s1251_s12, 4  ;;  %s1252_s14 = smov 512   ;;  %s18_s13 = int_to_ptr.vmem [resolvable:$true] %s17_s13 }
   0x3   :  { %s1253_s15 = smov 32  }
   0x4   :  { %23 = dma.hbm_to_vmem [thread:$0]  %s16_s11, 18432, %s18_s13, [#allocation3], %s1252_s14, %s1252_s14, %s1253_s15  }
   0x5   :  { %1247 = dma.done.wait [#allocation3], 18432  }
   0x6   :  { %1248 = vsyncadd [#allocation3], 4294948864  ;;  %v32_v0 = vld [vmem:[#allocation2 + $0x20] sm:$0xff]  ;;  %v34_v1 = vld [vmem:[#allocation2 + $0x30] sm:$0xff]  ;;  %vm133_vm0 = vcmask 130048   ;;  %s1040_s28 = sshll.u32 %s1808_s2, 4  ;;  %s1041_s28 = int_to_ptr.hbm [resolvable:$true] %s1040_s28 }
   0x7   :  { %v35_v2 = vld [vmem:[#allocation2 + $0x38] sm:$0xff]  ;;  %163 = vmatpush.msra.mxu0 %v32_v0  ;;  %1085 = vmatpush.msra.mxu1 %v32_v0  ;;  %v28_v3 = vld [vmem:[#allocation2] sm:$0xff]  ;;  %v30_v4 = vld [vmem:[#allocation2 + $0x10] sm:$0xff] }
   0x8   :  { %v31_v5 = vld [vmem:[#allocation2 + $0x18] sm:$0xff]  ;;  %227 = vmatpush.msra.mxu2 %v34_v1  ;;  %259 = vmatpush.msra.mxu3 %v35_v2  ;;  %v119_v6 = vld [vmem:[%s1806_s0] sm:$0xff]  ;;  %v33_v8 = vld [vmem:[#allocation2 + $0x28] sm:$0xff]  ;;  %v1254_v2 = vmov 0.0  }
   0x9   :  { %v1280_v7 = vld [vmem:[%s1806_s0 + $0x20] sm:$0xff]  ;;  %164 = vmatpush.msra.mxu0 %v28_v3  ;;  %1086 = vmatpush.msra.mxu1 %v28_v3  ;;  %v29_v10 = vld [vmem:[#allocation2 + $0x8] sm:$0xff]  ;;  %v1287_v11 = vld [vmem:[#allocation2 + $0x230] sm:$0xff] }
   0xa   :  { %228 = vmatpush.msra.mxu2 %v30_v4  ;;  %260 = vmatpush.msra.mxu3 %v31_v5  ;;  %v1282_v9 = vld [vmem:[#allocation2 + $0x220] sm:$0xff]  ;;  %v1292_v13 = vld [vmem:[#allocation2 + $0x228] sm:$0xff]  ;;  %v1296_v14 = vld [vmem:[#allocation2 + $0x238] sm:$0xff] }
   0xb   :  { %1863 = vst [vmem:[#allocation8_spill] sm:$0xff] %v1282_v9  ;;  %1050 = vmatmul.msk.f32.vlgmr.msra.gmra.mxu0 %vm133_vm0, %v119_v6  ;;  %1054 = vmatmul.msk.f32.vlgmr.msra.gmra.mxu1 %vm133_vm0, %v1280_v7  ;;  %v1290_v12 = vld [vmem:[#allocation2 + $0x200] sm:$0xff]  ;;  %v1298_v15 = vld [vmem:[#allocation2 + $0x210] sm:$0xff]  ;;  %v1303_v17 = vld [vmem:[#allocation2 + $0x208] sm:$0xff] }
   0xc   :  { %195 = vmatpush.msrb.mxu1 %v33_v8  ;;  %1060 = vmatmul.msk.f32.vlgmr.msra.gmra.mxu2 %vm133_vm0, %v119_v6  ;;  %1864 = vst [vmem:[#allocation9_spill] sm:$0xff] %v1290_v12  ;;  %v1300_v16 = vld [vmem:[#allocation2 + $0x1e0] sm:$0xff]  ;;  %v1307_v18 = vld [vmem:[#allocation2 + $0x218] sm:$0xff]  ;;  %v1309_v19 = vld [vmem:[#allocation2 + $0x1f0] sm:$0xff] }
   0xd   :  { %1065 = vmatmul.msk.f32.vlgmr.msra.gmra.mxu3 %vm133_vm0, %v119_v6  ;;  %277 = vmatpush.msrb.mxu0 %v1282_v9  ;;  %v1311_v20 = vld [vmem:[#allocation2 + $0x1c0] sm:$0xff]  ;;  %v120_v21 = vld [vmem:[%s1806_s0 + $0x8] sm:$0xff]  ;;  %v1328_v24 = vld [vmem:[#allocation2 + $0x1f8] sm:$0xff] }
   0xe   :  { %196 = vmatpush.msrb.mxu1 %v29_v10  ;;  %317 = vmatpush.msrb.mxu2 %v1287_v11  ;;  %v1320_v22 = vld [vmem:[#allocation2 + $0x1a0] sm:$0xff]  ;;  %v1326_v23 = vld [vmem:[#allocation2 + $0x1e8] sm:$0xff]  ;;  %v1334_v26 = vld [vmem:[#allocation2 + $0x1d0] sm:$0xff] }
   0xf   :  { %278 = vmatpush.msrb.mxu0 %v1290_v12  ;;  %337 = vmatpush.msrb.mxu3 %v1296_v14  ;;  %v1332_v25 = vld [vmem:[#allocation2 + $0x180] sm:$0xff]  ;;  %v1338_v27 = vld [vmem:[#allocation2 + $0x1d8] sm:$0xff]  ;;  %v1340_v28 = vld [vmem:[#allocation2 + $0x1c8] sm:$0xff] }
  0x10   :  { %297 = vmatpush.msra.mxu1 %v1292_v13  ;;  %318 = vmatpush.msrb.mxu2 %v1298_v15  ;;  %v1342_v29 = vld [vmem:[#allocation2 + $0x160] sm:$0xff]  ;;  %v1346_v30 = vld [vmem:[#allocation2 + $0x1b0] sm:$0xff]  ;;  %v1350_v31 = vld [vmem:[#allocation2 + $0x1b8] sm:$0xff] }
  0x11   :  { %279 = vmatpush.msrb.mxu0 %v1300_v16  ;;  %338 = vmatpush.msrb.mxu3 %v1307_v18  ;;  %v1352_v32 = vld [vmem:[#allocation2 + $0x1a8] sm:$0xff]  ;;  %v1354_v33 = vld [vmem:[#allocation2 + $0x140] sm:$0xff]  ;;  %v121_v34 = vld [vmem:[%s1806_s0 + $0x10] sm:$0xff] }
  0x12   :  { %298 = vmatpush.msra.mxu1 %v1303_v17  ;;  %319 = vmatpush.msrb.mxu2 %v1309_v19  ;;  %v1363_v35 = vld [vmem:[#allocation2 + $0x120] sm:$0xff]  ;;  %v1369_v36 = vld [vmem:[#allocation2 + $0x190] sm:$0xff]  ;;  %v1371_v37 = vld [vmem:[#allocation2 + $0x198] sm:$0xff] }
  0x13   :  { %280 = vmatpush.msrb.mxu0 %v1311_v20  ;;  %1055 = vmatmul.msk.f32.vlgmr.msrb.gmra.mxu1 %vm133_vm0, %v119_v6  ;;  %v1375_v38 = vld [vmem:[#allocation2 + $0x100] sm:$0xff]  ;;  %v1377_v39 = vld [vmem:[#allocation2 + $0x188] sm:$0xff]  ;;  %v1381_v40 = vld [vmem:[#allocation2 + $0x170] sm:$0xff] }
  0x14   :  { %1051 = vmatmul.msk.f32.gmra.mxu0 %vm133_vm0, %v120_v21  ;;  %1061 = vmatmul.msk.f32.gmra.mxu2 %vm133_vm0, %v120_v21  ;;  %v1383_v41 = vld [vmem:[#allocation2 + $0x178] sm:$0xff]  ;;  %v1387_v42 = vld [vmem:[#allocation2 + $0xe0] sm:$0xff]  ;;  %v1389_v43 = vld [vmem:[#allocation2 + $0x168] sm:$0xff] }
  0x15   :  { %1066 = vmatmul.msk.f32.gmra.mxu3 %vm133_vm0, %v120_v21  ;;  %281 = vmatpush.msrb.mxu0 %v1320_v22  ;;  %1865 = vst [vmem:[#allocation10_spill] sm:$0xff] %v1387_v42  ;;  %v1393_v44 = vld [vmem:[#allocation2 + $0x150] sm:$0xff]  ;;  %v1395_v45 = vld [vmem:[#allocation2 + $0x158] sm:$0xff]  ;;  %v1399_v46 = vld [vmem:[#allocation2 + $0xc0] sm:$0xff] }
  0x16   :  { %299 = vmatpush.msra.mxu1 %v1326_v23  ;;  %339 = vmatpush.msrb.mxu3 %v1328_v24  ;;  %1866 = vst [vmem:[#allocation11_spill] sm:$0xff] %v1399_v46  ;;  %v122_v47 = vld [vmem:[%s1806_s0 + $0x18] sm:$0xff]  ;;  %v1408_v48 = vld [vmem:[#allocation2 + $0xa0] sm:$0xff]  ;;  %v1412_v49 = vld [vmem:[#allocation2 + $0x130] sm:$0xff]  ;;  %s1255_s0 = smov [#allocation5]  }
  0x17   :  { %282 = vmatpush.msrb.mxu0 %v1332_v25  ;;  %320 = vmatpush.msrb.mxu2 %v1334_v26  ;;  %1867 = vst [vmem:[#allocation12_spill] sm:$0xff] %v1408_v48  ;;  %v1414_v50 = vld [vmem:[#allocation2 + $0x138] sm:$0xff]  ;;  %v1418_v51 = vld [vmem:[#allocation2 + $0x148] sm:$0xff]  ;;  %v1420_v52 = vld [vmem:[#allocation2 + $0x80] sm:$0xff]  ;;  %s1038_s25 = sshll.u32 %s1255_s0, 4  ;;  %s1039_s25 = int_to_ptr.vmem [resolvable:$true] %s1038_s25 }
  0x18   :  { %340 = vmatpush.msrb.mxu3 %v1338_v27  ;;  %300 = vmatpush.msra.mxu1 %v1340_v28  ;;  %1868 = vst [vmem:[#allocation13_spill] sm:$0xff] %v1420_v52  ;;  %v1424_v53 = vld [vmem:[#allocation2 + $0x110] sm:$0xff]  ;;  %v1426_v54 = vld [vmem:[#allocation2 + $0x118] sm:$0xff]  ;;  %v1430_v55 = vld [vmem:[#allocation2 + $0x128] sm:$0xff] }
  0x19   :  { %283 = vmatpush.msrb.mxu0 %v1342_v29  ;;  %321 = vmatpush.msrb.mxu2 %v1346_v30  ;;  %1869 = vst [vmem:[#allocation14_spill] sm:$0xff] %v1424_v53  ;;  %v1432_v56 = vld [vmem:[#allocation2 + $0x60] sm:$0xff]  ;;  %v1436_v57 = vld [vmem:[#allocation2 + $0xf0] sm:$0xff]  ;;  %v1438_v58 = vld [vmem:[#allocation2 + $0xf8] sm:$0xff] }
  0x1a   :  { %341 = vmatpush.msrb.mxu3 %v1350_v31  ;;  %301 = vmatpush.msra.mxu1 %v1352_v32  ;;  %1870 = vst [vmem:[#allocation15_spill] sm:$0xff] %v1426_v54  ;;  %v1442_v59 = vld [vmem:[#allocation2 + $0x40] sm:$0xff]  ;;  %v1444_v60 = vld [vmem:[#allocation2 + $0x108] sm:$0xff]  ;;  %v1448_v61 = vld [vmem:[#allocation2 + $0xd0] sm:$0xff] }
  0x1b   :  { %284 = vmatpush.msrb.mxu0 %v1354_v33  ;;  %1056 = vmatmul.msk.f32.gmra.mxu1 %vm133_vm0, %v120_v21  ;;  %1871 = vst [vmem:[#allocation16_spill] sm:$0xff] %v1432_v56  ;;  %v1450_v62 = vld [vmem:[#allocation2 + $0xd8] sm:$0xff]  ;;  %v1458_v63 = vld [vmem:[#allocation2 + $0xe8] sm:$0xff]  ;;  %v1460_v0 = vld [vmem:[#allocation2 + $0xb0] sm:$0xff] }
  0x1c   :  { %1052 = vmatmul.msk.f32.gmra.mxu0 %vm133_vm0, %v121_v34  ;;  %1062 = vmatmul.msk.f32.gmra.mxu2 %vm133_vm0, %v121_v34  ;;  %1872 = vst [vmem:[#allocation17_spill] sm:$0xff] %v1436_v57  ;;  %v1465_v1 = vld [vmem:[#allocation2 + $0xb8] sm:$0xff]  ;;  %v1469_v3 = vld [vmem:[#allocation2 + $0x90] sm:$0xff]  ;;  %v1471_v4 = vld [vmem:[#allocation2 + $0xc8] sm:$0xff] }
  0x1d   :  { %1067 = vmatmul.msk.f32.gmra.mxu3 %vm133_vm0, %v121_v34  ;;  %285 = vmatpush.msrb.mxu0 %v1363_v35  ;;  %1873 = vst [vmem:[#allocation18_spill] sm:$0xff] %v1438_v58  ;;  %v1475_v5 = vld [vmem:[#allocation2 + $0x98] sm:$0xff]  ;;  %v1478_v6 = vld [vmem:[#allocation2 + $0x70] sm:$0xff]  ;;  %v1480_v8 = vld [vmem:[#allocation2 + $0xa8] sm:$0xff] }
  0x1e   :  { %322 = vmatpush.msrb.mxu2 %v1369_v36  ;;  %342 = vmatpush.msrb.mxu3 %v1371_v37  ;;  %1874 = vst [vmem:[#allocation19_spill] sm:$0xff] %v1442_v59  ;;  %v1485_v10 = vld [vmem:[#allocation2 + $0x78] sm:$0xff]  ;;  %v1488_v21 = vld [vmem:[#allocation2 + $0x50] sm:$0xff] }
  0x1f   :  { %286 = vmatpush.msrb.mxu0 %v1375_v38  ;;  %302 = vmatpush.msra.mxu1 %v1377_v39  ;;  %1875 = vst [vmem:[#allocation20_spill] sm:$0xff] %v1448_v61 }
  0x20   :  { %323 = vmatpush.msrb.mxu2 %v1381_v40  ;;  %343 = vmatpush.msrb.mxu3 %v1383_v41  ;;  %1876 = vst [vmem:[#allocation21_spill] sm:$0xff] %v1450_v62 }
  0x21   :  { %287 = vmatpush.msrb.mxu0 %v1387_v42  ;;  %303 = vmatpush.msra.mxu1 %v1389_v43  ;;  %1877 = vst [vmem:[#allocation22_spill] sm:$0xff] %v1458_v63 }
  0x22   :  { %324 = vmatpush.msrb.mxu2 %v1393_v44  ;;  %344 = vmatpush.msrb.mxu3 %v1395_v45  ;;  %1878 = vst [vmem:[#allocation23_spill] sm:$0xff] %v1460_v0 }
  0x23   :  { %288 = vmatpush.msrb.mxu0 %v1399_v46  ;;  %1057 = vmatmul.msk.f32.gmra.mxu1 %vm133_vm0, %v121_v34  ;;  %1879 = vst [vmem:[#allocation24_spill] sm:$0xff] %v1465_v1  ;;  %v1493_v34 = vld [vmem:[#allocation2 + $0x58] sm:$0xff] }
  0x24   :  { %1053 = vmatmul.msk.f32.gmra.mxu0 %vm133_vm0, %v122_v47  ;;  %1063 = vmatmul.msk.f32.gmra.mxu2 %vm133_vm0, %v122_v47  ;;  %1880 = vst [vmem:[#allocation25_spill] sm:$0xff] %v1469_v3 }
  0x25   :  { %1068 = vmatmul.msk.f32.gmra.mxu3 %vm133_vm0, %v122_v47  ;;  %289 = vmatpush.msrb.mxu0 %v1408_v48  ;;  %1881 = vst [vmem:[#allocation26_spill] sm:$0xff] %v1471_v4 }
  0x26   :  { %325 = vmatpush.msrb.mxu2 %v1412_v49  ;;  %345 = vmatpush.msrb.mxu3 %v1414_v50  ;;  %1882 = vst [vmem:[#allocation27_spill] sm:$0xff] %v1475_v5 }
  0x27   :  { %304 = vmatpush.msra.mxu1 %v1418_v51  ;;  %290 = vmatpush.msrb.mxu0 %v1420_v52  ;;  %1883 = vst [vmem:[#allocation28_spill] sm:$0xff] %v1478_v6 }
  0x28   :  { %326 = vmatpush.msrb.mxu2 %v1424_v53  ;;  %346 = vmatpush.msrb.mxu3 %v1426_v54  ;;  %1884 = vst [vmem:[#allocation29_spill] sm:$0xff] %v1480_v8 }
  0x29   :  { %305 = vmatpush.msra.mxu1 %v1430_v55  ;;  %291 = vmatpush.msrb.mxu0 %v1432_v56  ;;  %1885 = vst [vmem:[#allocation30_spill] sm:$0xff] %v1485_v10 }
  0x2a   :  { %327 = vmatpush.msrb.mxu2 %v1436_v57  ;;  %347 = vmatpush.msrb.mxu3 %v1438_v58  ;;  %1886 = vst [vmem:[#allocation31_spill] sm:$0xff] %v1488_v21 }
  0x2b   :  { %292 = vmatpush.msrb.mxu0 %v1442_v59  ;;  %306 = vmatpush.msra.mxu1 %v1444_v60  ;;  %1887 = vst [vmem:[#allocation32_spill] sm:$0xff] %v1493_v34 }
  0x2c   :  { %328 = vmatpush.msrb.mxu2 %v1448_v61  ;;  %348 = vmatpush.msrb.mxu3 %v1450_v62 }
  0x2d   :  { %1058 = vmatmul.msk.f32.gmra.mxu1 %vm133_vm0, %v122_v47  ;;  %1064 = vmatmul.msk.f32.gmra.mxu2 %vm133_vm0, %v1280_v7  ;;  %v1496_v47 = vld [vmem:[#allocation2 + $0x88] sm:$0xff] }
  0x2e   :  { %1069 = vmatmul.msk.f32.gmra.mxu3 %vm133_vm0, %v1280_v7  ;;  %293 = vmatmul.f32.vlgmr.msrb.gmra.mxu0 %v1254_v2  ;;  %1888 = vst [vmem:[#allocation33_spill] sm:$0xff] %v1496_v47 }
  0x2f   :  { %307 = vmatpush.msra.mxu1 %v1458_v63  ;;  %329 = vmatpush.msrb.mxu2 %v1460_v0 }
  0x30   :  { %349 = vmatpush.msrb.mxu3 %v1465_v1  ;;  %424 = vmatpush.msra.mxu0 %v1282_v9  ;;  %v1506_v9 = vld [vmem:[#allocation2 + $0x48] sm:$0xff] }
  0x31   :  { %330 = vmatpush.msrb.mxu2 %v1469_v3  ;;  %308 = vmatpush.msra.mxu1 %v1471_v4  ;;  %1890 = vst [vmem:[#allocation35_spill] sm:$0xff] %v1506_v9 }
  0x32   :  { %350 = vmatpush.msrb.mxu3 %v1475_v5  ;;  %425 = vmatpush.msra.mxu0 %v1290_v12  ;;  %v1503_v12 = vld [vmem:[#allocation2 + $0x68] sm:$0xff] }
  0x33   :  { %331 = vmatpush.msrb.mxu2 %v1478_v6  ;;  %309 = vmatpush.msra.mxu1 %v1480_v8  ;;  %1889 = vst [vmem:[#allocation34_spill] sm:$0xff] %v1503_v12 }
  0x34   :  { %351 = vmatpush.msrb.mxu3 %v1485_v10  ;;  %426 = vmatpush.msra.mxu0 %v1300_v16 }
  0x35   :  { %332 = vmatpush.msrb.mxu2 %v1488_v21  ;;  %1059 = vmatmul.msk.f32.gmra.mxu1 %vm133_vm0, %v1280_v7  ;;  %v1891_v7 = vld [vmem:[#allocation8_spill] sm:$0xff] }
  0x36   :  { %352 = vmatpush.msrb.mxu3 %v1493_v34  ;;  %333 = vmatmul.f32.vlgmr.msrb.gmra.mxu2 %v1254_v2 }
  0x37   :  { %353 = vmatmul.f32.vlgmr.msrb.gmra.mxu3 %v1254_v2  ;;  %310 = vmatpush.msra.mxu1 %v1496_v47 }
  0x38   :  { %464 = vmatpush.msra.mxu2 %v1287_v11  ;;  %484 = vmatpush.msra.mxu3 %v1296_v14 }
  0x39   :  { %311 = vmatpush.msra.mxu1 %v1503_v12  ;;  %427 = vmatpush.msra.mxu0 %v1311_v20 }
  0x3a   :  { %465 = vmatpush.msra.mxu2 %v1298_v15  ;;  %485 = vmatpush.msra.mxu3 %v1307_v18 }
  0x3b   :  { %312 = vmatpush.msra.mxu1 %v1506_v9  ;;  %428 = vmatpush.msra.mxu0 %v1320_v22 }
  0x3c   :  { %466 = vmatpush.msra.mxu2 %v1309_v19  ;;  %486 = vmatpush.msra.mxu3 %v1328_v24 }
  0x3d   :  { %444 = vmatpush.msrb.mxu1 %v1292_v13  ;;  %429 = vmatpush.msra.mxu0 %v1332_v25 }
  0x3e   :  { %313 = vmatmul.f32.vlgmr.msra.gmra.mxu1 %v1254_v2  ;;  %467 = vmatpush.msra.mxu2 %v1334_v26  ;;  %v1892_v2 = vld [vmem:[#allocation9_spill] sm:$0xff] }
  0x3f   :  { %445 = vmatpush.msrb.mxu1 %v1303_v17  ;;  %487 = vmatpush.msra.mxu3 %v1338_v27 }
  0x40   :  { %468 = vmatpush.msra.mxu2 %v1346_v30  ;;  %430 = vmatpush.msra.mxu0 %v1342_v29 }
  0x41   :  { %446 = vmatpush.msrb.mxu1 %v1326_v23  ;;  %488 = vmatpush.msra.mxu3 %v1350_v31 }
  0x42   :  { %469 = vmatpush.msra.mxu2 %v1369_v36  ;;  %431 = vmatpush.msra.mxu0 %v1354_v33 }
  0x43   :  { %447 = vmatpush.msrb.mxu1 %v1340_v28  ;;  %489 = vmatpush.msra.mxu3 %v1371_v37 }
  0x44   :  { %470 = vmatpush.msra.mxu2 %v1381_v40  ;;  %432 = vmatpush.msra.mxu0 %v1363_v35 }
  0x45   :  { %448 = vmatpush.msrb.mxu1 %v1352_v32  ;;  %490 = vmatpush.msra.mxu3 %v1383_v41 }
  0x46   :  { %471 = vmatpush.msra.mxu2 %v1393_v44  ;;  %433 = vmatpush.msra.mxu0 %v1375_v38 }
  0x47   :  { %449 = vmatpush.msrb.mxu1 %v1377_v39  ;;  %491 = vmatpush.msra.mxu3 %v1395_v45 }
  0x48   :  { %472 = vmatpush.msra.mxu2 %v1412_v49  ;;  %434 = vmatpush.msra.mxu0 %v1387_v42 }
  0x49   :  { %450 = vmatpush.msrb.mxu1 %v1389_v43  ;;  %492 = vmatpush.msra.mxu3 %v1414_v50 }
  0x4a   :  { %473 = vmatpush.msra.mxu2 %v1424_v53  ;;  %435 = vmatpush.msra.mxu0 %v1399_v46 }
  0x4b   :  { %451 = vmatpush.msrb.mxu1 %v1418_v51  ;;  %493 = vmatpush.msra.mxu3 %v1426_v54 }
  0x4c   :  { %474 = vmatpush.msra.mxu2 %v1436_v57  ;;  %436 = vmatpush.msra.mxu0 %v1408_v48 }
  0x4d   :  { %452 = vmatpush.msrb.mxu1 %v1430_v55  ;;  %494 = vmatpush.msra.mxu3 %v1438_v58 }
  0x4e   :  { %475 = vmatpush.msra.mxu2 %v1448_v61  ;;  %437 = vmatpush.msra.mxu0 %v1420_v52 }
  0x4f   :  { %453 = vmatpush.msrb.mxu1 %v1444_v60  ;;  %495 = vmatpush.msra.mxu3 %v1450_v62 }
  0x50   :  { %476 = vmatpush.msra.mxu2 %v1460_v0  ;;  %438 = vmatpush.msra.mxu0 %v1432_v56 }
  0x51   :  { %454 = vmatpush.msrb.mxu1 %v1458_v63  ;;  %496 = vmatpush.msra.mxu3 %v1465_v1 }
  0x52   :  { %477 = vmatpush.msra.mxu2 %v1469_v3  ;;  %439 = vmatpush.msra.mxu0 %v1442_v59 }
  0x53   :  { %455 = vmatpush.msrb.mxu1 %v1471_v4  ;;  %497 = vmatpush.msra.mxu3 %v1475_v5 }
  0x54   :  { %478 = vmatpush.msra.mxu2 %v1478_v6  ;;  %571 = vmatpush.msrb.mxu0 %v1891_v7 }
  0x55   :  { %456 = vmatpush.msrb.mxu1 %v1480_v8  ;;  %498 = vmatpush.msra.mxu3 %v1485_v10 }
  0x56   :  { %479 = vmatpush.msra.mxu2 %v1488_v21  ;;  %572 = vmatpush.msrb.mxu0 %v1892_v2 }
  0x57   :  { %457 = vmatpush.msrb.mxu1 %v1496_v47  ;;  %499 = vmatpush.msra.mxu3 %v1493_v34 }
  0x58   :  { %611 = vmatpush.msrb.mxu2 %v1287_v11  ;;  %573 = vmatpush.msrb.mxu0 %v1300_v16 }
  0x59   :  { %458 = vmatpush.msrb.mxu1 %v1503_v12  ;;  %631 = vmatpush.msrb.mxu3 %v1296_v14 }
  0x5a   :  { %612 = vmatpush.msrb.mxu2 %v1298_v15  ;;  %574 = vmatpush.msrb.mxu0 %v1311_v20 }
  0x5b   :  { %459 = vmatpush.msrb.mxu1 %v1506_v9  ;;  %632 = vmatpush.msrb.mxu3 %v1307_v18 }
  0x5c   :  { %613 = vmatpush.msrb.mxu2 %v1309_v19  ;;  %575 = vmatpush.msrb.mxu0 %v1320_v22 }
  0x5d   :  { %591 = vmatpush.msra.mxu1 %v1292_v13  ;;  %633 = vmatpush.msrb.mxu3 %v1328_v24 }
  0x5e   :  { %614 = vmatpush.msrb.mxu2 %v1334_v26  ;;  %576 = vmatpush.msrb.mxu0 %v1332_v25 }
  0x5f   :  { %592 = vmatpush.msra.mxu1 %v1303_v17  ;;  %634 = vmatpush.msrb.mxu3 %v1338_v27 }
  0x60   :  { %615 = vmatpush.msrb.mxu2 %v1346_v30  ;;  %577 = vmatpush.msrb.mxu0 %v1342_v29 }
  0x61   :  { %593 = vmatpush.msra.mxu1 %v1326_v23  ;;  %635 = vmatpush.msrb.mxu3 %v1350_v31 }
  0x62   :  { %616 = vmatpush.msrb.mxu2 %v1369_v36  ;;  %578 = vmatpush.msrb.mxu0 %v1354_v33 }
  0x63   :  { %594 = vmatpush.msra.mxu1 %v1340_v28  ;;  %636 = vmatpush.msrb.mxu3 %v1371_v37 }
  0x64   :  { %617 = vmatpush.msrb.mxu2 %v1381_v40  ;;  %579 = vmatpush.msrb.mxu0 %v1363_v35 }
  0x65   :  { %595 = vmatpush.msra.mxu1 %v1352_v32  ;;  %637 = vmatpush.msrb.mxu3 %v1383_v41 }
  0x66   :  { %618 = vmatpush.msrb.mxu2 %v1393_v44  ;;  %580 = vmatpush.msrb.mxu0 %v1375_v38 }
  0x67   :  { %596 = vmatpush.msra.mxu1 %v1377_v39  ;;  %638 = vmatpush.msrb.mxu3 %v1395_v45 }
  0x68   :  { %619 = vmatpush.msrb.mxu2 %v1412_v49  ;;  %581 = vmatpush.msrb.mxu0 %v1387_v42 }
  0x69   :  { %597 = vmatpush.msra.mxu1 %v1389_v43  ;;  %639 = vmatpush.msrb.mxu3 %v1414_v50 }
  0x6a   :  { %620 = vmatpush.msrb.mxu2 %v1424_v53  ;;  %582 = vmatpush.msrb.mxu0 %v1399_v46 }
  0x6b   :  { %598 = vmatpush.msra.mxu1 %v1418_v51  ;;  %640 = vmatpush.msrb.mxu3 %v1426_v54 }
  0x6c   :  { %621 = vmatpush.msrb.mxu2 %v1436_v57  ;;  %583 = vmatpush.msrb.mxu0 %v1408_v48 }
  0x6d   :  { %599 = vmatpush.msra.mxu1 %v1430_v55  ;;  %641 = vmatpush.msrb.mxu3 %v1438_v58 }
  0x6e   :  { %622 = vmatpush.msrb.mxu2 %v1448_v61  ;;  %584 = vmatpush.msrb.mxu0 %v1420_v52 }
  0x6f   :  { %600 = vmatpush.msra.mxu1 %v1444_v60  ;;  %642 = vmatpush.msrb.mxu3 %v1450_v62 }
  0x70   :  { %623 = vmatpush.msrb.mxu2 %v1460_v0  ;;  %585 = vmatpush.msrb.mxu0 %v1432_v56 }
  0x71   :  { %601 = vmatpush.msra.mxu1 %v1458_v63  ;;  %643 = vmatpush.msrb.mxu3 %v1465_v1 }
  0x72   :  { %624 = vmatpush.msrb.mxu2 %v1469_v3  ;;  %586 = vmatpush.msrb.mxu0 %v1442_v59 }
  0x73   :  { %602 = vmatpush.msra.mxu1 %v1471_v4  ;;  %644 = vmatpush.msrb.mxu3 %v1475_v5  ;;  %v101_v5 = vld [vmem:[#allocation2 + $0x240] ss:$8 sm:$0xf] }
  0x74   :  { %625 = vmatpush.msrb.mxu2 %v1478_v6  ;;  %v125_v3 = vperm.slane %v101_v5, 0 }
  0x75   :  { %603 = vmatpush.msra.mxu1 %v1480_v8  ;;  %645 = vmatpush.msrb.mxu3 %v1485_v10  ;;  %v128_v8 = vperm.slane %v101_v5, 3 }
  0x76   :  { %626 = vmatpush.msrb.mxu2 %v1488_v21  ;;  %v127_v21 = vperm.slane %v101_v5, 2 }
  0x77   :  { %604 = vmatpush.msra.mxu1 %v1496_v47  ;;  %646 = vmatpush.msrb.mxu3 %v1493_v34  ;;  %v126_v34 = vperm.slane %v101_v5, 1 }
  0x79   :  { %605 = vmatpush.msra.mxu1 %v1503_v12 }
  0x7b   :  { %606 = vmatpush.msra.mxu1 %v1506_v9 }
  0x88   :  { %v166_v52 = vpop.f32.mrf.mxu0  ;;  %v178_v56 = vpop.f32.mrf.mxu1 }
  0x89   :  { %v1635_v1 = vadd.f32 %v178_v56, %v125_v3 }
  0x8b   :  { %1893 = vst [vmem:[#allocation8_spill] sm:$0xff] %v1635_v1 }
  0x8f   :  { %v230_v6 = vpop.f32.mrf.mxu2 }
  0x90   :  { %v1637_v10 = vpop.f32.mrf.mxu3  ;;  %v198_v47 = vpop.f32.mrf.mxu1 }
  0x91   :  { %v169_v0 = vpop.f32.mrf.mxu0 }
  0x92   :  { %v1639_v59 = vadd.f32 %v169_v0, %v125_v3 }
  0x94   :  { %1894 = vst [vmem:[#allocation9_spill] sm:$0xff] %v1639_v59 }
  0x97   :  { %v233_v48 = vpop.f32.mrf.mxu2 }
  0x98   :  { %v1641_v12 = vadd.f32 %v233_v48, %v127_v21  ;;  %v265_v9 = vpop.f32.mrf.mxu3  ;;  %v201_v62 = vpop.f32.mrf.mxu1 }
  0x99   :  { %v1643_v61 = vadd.f32 %v265_v9, %v128_v8  ;;  %v172_v4 = vpop.f32.mrf.mxu0  ;;  %v1645_v56 = vadd.f32 %v201_v62, %v126_v34 }
  0x9a   :  { %1895 = vst [vmem:[#allocation36_spill] sm:$0xff] %v1641_v12  ;;  %v1647_v1 = vadd.f32 %v172_v4, %v125_v3  ;;  %v167_v4 = vadd.f32 %v166_v52, %v125_v3  ;;  %v199_v52 = vadd.f32 %v198_v47, %v126_v34 }
  0x9b   :  { %1896 = vst [vmem:[#allocation37_spill] sm:$0xff] %v1643_v61 }
  0x9c   :  { %1897 = vst [vmem:[#allocation38_spill] sm:$0xff] %v1645_v56 }
  0x9d   :  { %1898 = vst [vmem:[#allocation39_spill] sm:$0xff] %v1647_v1 }
  0x9f   :  { %v236_v46 = vpop.f32.mrf.mxu2 }
  0xa0   :  { %v1649_v58 = vadd.f32 %v236_v46, %v127_v21  ;;  %v268_v0 = vpop.f32.mrf.mxu3  ;;  %v204_v59 = vpop.f32.mrf.mxu1 }
  0xa1   :  { %v1651_v57 = vadd.f32 %v268_v0, %v128_v8  ;;  %v175_v5 = vpop.f32.mrf.mxu0  ;;  %v1653_v63 = vadd.f32 %v204_v59, %v126_v34 }
  0xa2   :  { %1899 = vst [vmem:[#allocation40_spill] sm:$0xff] %v1649_v58  ;;  %v1655_v48 = vadd.f32 %v175_v5, %v125_v3 }
  0xa3   :  { %1900 = vst [vmem:[#allocation41_spill] sm:$0xff] %v1651_v57 }
  0xa4   :  { %1901 = vst [vmem:[#allocation42_spill] sm:$0xff] %v1653_v63 }
  0xa5   :  { %1902 = vst [vmem:[#allocation43_spill] sm:$0xff] %v1655_v48 }
  0xa7   :  { %v239_v12 = vpop.f32.mrf.mxu2 }
  0xa8   :  { %v1657_v9 = vadd.f32 %v239_v12, %v127_v21  ;;  %v271_v61 = vpop.f32.mrf.mxu3 }
  0xa9   :  { %v1659_v62 = vadd.f32 %v271_v61, %v128_v8 }
  0xaa   :  { %1903 = vst [vmem:[#allocation44_spill] sm:$0xff] %v1657_v9  ;;  %v207_v1 = vpop.f32.mrf.mxu1 }
  0xab   :  { %1904 = vst [vmem:[#allocation45_spill] sm:$0xff] %v1659_v62  ;;  %v1661_v56 = vadd.f32 %v207_v1, %v126_v34  ;;  %v294_v46 = vpop.f32.mrf.mxu0  ;;  %v231_v62 = vadd.f32 %v230_v6, %v127_v21 }
  0xac   :  { %v357_v58 = vadd.f32 %v294_v46, %v167_v4 }
  0xad   :  { %1905 = vst [vmem:[#allocation46_spill] sm:$0xff] %v1661_v56 }
  0xae   :  { %v1070_v42 = vmul.f32 -1.442695, %v357_v58 }
  0xb0   :  { %1092 = vpow2.f32 %v1070_v42  ;;  %v242_v0 = vpop.f32.mrf.mxu2 }
  0xb1   :  { %v1663_v57 = vadd.f32 %v242_v0, %v127_v21  ;;  %v274_v59 = vpop.f32.mrf.mxu3 }
  0xb2   :  { %v1665_v5 = vadd.f32 %v274_v59, %v128_v8  ;;  %v210_v48 = vpop.f32.mrf.mxu1 }
  0xb3   :  { %1906 = vst [vmem:[#allocation47_spill] sm:$0xff] %v1663_v57  ;;  %v1667_v12 = vadd.f32 %v210_v48, %v126_v34  ;;  %v263_v34 = vadd.f32 %v1637_v10, %v128_v8 }
  0xb4   :  { %1907 = vst [vmem:[#allocation48_spill] sm:$0xff] %v1665_v5 }
  0xb5   :  { %1908 = vst [vmem:[#allocation49_spill] sm:$0xff] %v1667_v12 }
  0xb6   :  { %v1093_v9 = vpop.eup %1092 }
  0xb7   :  { %v370_v61 = vadd.f32 1.0, %v1093_v9 }
  0xb9   :  { %v334_v3 = vpop.f32.mrf.mxu2  ;;  %1094 = vrcp.f32 %v370_v61  ;;  %vm378_vm2 = vweird.f32 %v370_v61 }
  0xba   :  { %v359_v1 = vadd.f32 %v334_v3, %v231_v62  ;;  %v354_v6 = vpop.f32.mrf.mxu3 }
  0xbb   :  { %v314_v56 = vpop.f32.mrf.mxu1 }
  0xbc   :  { %v358_v4 = vadd.f32 %v314_v56, %v199_v52  ;;  %v1072_v58 = vmul.f32 -1.442695, %v359_v1  ;;  %v360_v56 = vadd.f32 %v354_v6, %v263_v34  ;;  %v384_v1 = vand.u32 2147483648, %v370_v61 }
  0xbe   :  { %v1071_v42 = vmul.f32 -1.442695, %v358_v4  ;;  %1096 = vpow2.f32 %v1072_v58  ;;  %v382_v4 = vand.u32 2147483647, %v370_v61  ;;  %v385_v8 = vor.u32 1.1754944e-38, %v384_v1 }
  0xbf   :  { %v1095_v46 = vpop.eup %1094 }
  0xc0   :  { %1098 = vpow2.f32 %v1071_v42  ;;  %v374_v0 = vmul.f32 %v1095_v46, %v370_v61  ;;  %vm379_vm1 = vweird.f32 %v1095_v46  ;;  %vm383_vm5 = vcmp.eq.f32.partialorder %v382_v4, 8.507059e+37 }
  0xc1   :  { %vm380_vm3 = vmor %vm378_vm2, %vm379_vm1 }
  0xc2   :  { %v375_v12 = vsub.f32 1.0, %v374_v0 }
  0xc4   :  { %v1097_v59 = vpop.eup %1096  ;;  %v376_v21 = vmul.f32 %v1095_v46, %v375_v12 }
  0xc5   :  { %v372_v57 = vadd.f32 1.0, %v1097_v59 }
  0xc6   :  { %v1099_v5 = vpop.eup %1098  ;;  %v377_v62 = vadd.f32 %v1095_v46, %v376_v21 }
  0xc7   :  { %v371_v48 = vadd.f32 1.0, %v1099_v5  ;;  %1100 = vrcp.f32 %v372_v57  ;;  %vm408_vm10 = vweird.f32 %v372_v57 }
  0xc8   :  { %v381_v42 = vsel %vm380_vm3, %v1095_v46, %v377_v62  ;;  %v414_v62 = vand.u32 2147483648, %v372_v57 }
  0xc9   :  { %1102 = vrcp.f32 %v371_v48  ;;  %v399_v5 = vand.u32 2147483648, %v371_v48  ;;  %v397_v12 = vand.u32 2147483647, %v371_v48  ;;  %vm393_vm6 = vweird.f32 %v371_v48 }
  0xca   :  { %1104 = vtanh.f32 %v360_v56  ;;  %v386_v6 = vsel %vm383_vm5, %v385_v8, %v381_v42  ;;  %v415_v1 = vor.u32 1.1754944e-38, %v414_v62  ;;  %v1936_v42 = vld [vmem:[#allocation38_spill] sm:$0xff] }
  0xcb   :  { %v400_v21 = vor.u32 1.1754944e-38, %v399_v5  ;;  %vm398_vm8 = vcmp.eq.f32.partialorder %v397_v12, 8.507059e+37 }
  0xcd   :  { %v1101_v47 = vpop.eup %1100 }
  0xce   :  { %v404_v3 = vmul.f32 %v1101_v47, %v372_v57  ;;  %vm409_vm9 = vweird.f32 %v1101_v47 }
  0xcf   :  { %v1103_v9 = vpop.eup %1102  ;;  %vm410_vm11 = vmor %vm408_vm10, %vm409_vm9 }
  0xd0   :  { %v389_v52 = vmul.f32 %v1103_v9, %v371_v48  ;;  %vm394_vm4 = vweird.f32 %v1103_v9  ;;  %v405_v59 = vsub.f32 1.0, %v404_v3  ;;  %v1105_v63 = vpop.eup %1104  ;;  %v412_v3 = vand.u32 2147483647, %v372_v57  ;;  %v1933_v57 = vld [vmem:[#allocation31_spill] sm:$0xff] }
  0xd1   :  { %vm395_vm7 = vmor %vm393_vm6, %vm394_vm4  ;;  %v420_v54 = vmul.f32 %v1105_v63, %v386_v6  ;;  %v1934_v63 = vld [vmem:[#allocation32_spill] sm:$0xff] }
  0xd2   :  { %v390_v58 = vsub.f32 1.0, %v389_v52  ;;  %v406_v52 = vmul.f32 %v1101_v47, %v405_v59  ;;  %vm413_vm12 = vcmp.eq.f32.partialorder %v412_v3, 8.507059e+37 }
  0xd4   :  { %v391_v0 = vmul.f32 %v1103_v9, %v390_v58  ;;  %v407_v46 = vadd.f32 %v1101_v47, %v406_v52 }
  0xd6   :  { %v392_v10 = vadd.f32 %v1103_v9, %v391_v0  ;;  %v411_v48 = vsel %vm410_vm11, %v1101_v47, %v407_v46  ;;  %v1935_v47 = vld [vmem:[#allocation9_spill] sm:$0xff] }
  0xd7   :  { %v416_v4 = vsel %vm413_vm12, %v415_v1, %v411_v48  ;;  %v1938_v1 = vld [vmem:[#allocation37_spill] sm:$0xff] }
  0xd8   :  { %v396_v34 = vsel %vm395_vm7, %v1103_v9, %v392_v10  ;;  %v1937_v10 = vld [vmem:[#allocation36_spill] sm:$0xff] }
  0xd9   :  { %v401_v61 = vsel %vm398_vm8, %v400_v21, %v396_v34 }
  0xda   :  { %v419_v56 = vmul.f32 0.0, %v401_v61 }
  0xdc   :  { %v1670_v53 = vadd.f32 %v420_v54, %v419_v56  ;;  %v1932_v54 = vld [vmem:[#allocation35_spill] sm:$0xff] }
  0xde   :  { %1106 = vtanh.f32 %v1670_v53 }
  0xe4   :  { %v1107_v9 = vpop.eup %1106 }
  0xe5   :  { %v423_v58 = vmul.f32 %v1107_v9, %v416_v4 }
  0xe7   :  { %440 = vmatmul.f32.vlgmr.msra.gmra.mxu0 %v423_v58  ;;  %460 = vmatmul.f32.vlgmr.msrb.gmra.mxu1 %v423_v58 }
  0xe8   :  { %480 = vmatmul.f32.vlgmr.msra.gmra.mxu2 %v423_v58  ;;  %500 = vmatmul.f32.vlgmr.msra.gmra.mxu3 %v423_v58 }
  0xe9   :  { %718 = vmatpush.msra.mxu0 %v1891_v7  ;;  %738 = vmatpush.msrb.mxu1 %v1292_v13  ;;  %v1910_v13 = vld [vmem:[#allocation15_spill] sm:$0xff] }
  0xea   :  { %758 = vmatpush.msra.mxu2 %v1287_v11  ;;  %778 = vmatpush.msra.mxu3 %v1296_v14  ;;  %v1909_v11 = vld [vmem:[#allocation14_spill] sm:$0xff] }
  0xeb   :  { %719 = vmatpush.msra.mxu0 %v1892_v2  ;;  %739 = vmatpush.msrb.mxu1 %v1303_v17  ;;  %v1911_v14 = vld [vmem:[#allocation10_spill] sm:$0xff] }
  0xec   :  { %759 = vmatpush.msra.mxu2 %v1298_v15  ;;  %779 = vmatpush.msra.mxu3 %v1307_v18  ;;  %v1912_v15 = vld [vmem:[#allocation22_spill] sm:$0xff]  ;;  %v1915_v18 = vld [vmem:[#allocation11_spill] sm:$0xff] }
  0xed   :  { %720 = vmatpush.msra.mxu0 %v1300_v16  ;;  %740 = vmatpush.msrb.mxu1 %v1326_v23  ;;  %v1913_v16 = vld [vmem:[#allocation17_spill] sm:$0xff]  ;;  %v1914_v17 = vld [vmem:[#allocation18_spill] sm:$0xff]  ;;  %v1919_v23 = vld [vmem:[#allocation12_spill] sm:$0xff] }
  0xee   :  { %760 = vmatpush.msra.mxu2 %v1309_v19  ;;  %780 = vmatpush.msra.mxu3 %v1328_v24  ;;  %v1916_v19 = vld [vmem:[#allocation26_spill] sm:$0xff]  ;;  %v1920_v24 = vld [vmem:[#allocation29_spill] sm:$0xff] }
  0xef   :  { %721 = vmatpush.msra.mxu0 %v1311_v20  ;;  %741 = vmatpush.msrb.mxu1 %v1340_v28  ;;  %v1917_v20 = vld [vmem:[#allocation20_spill] sm:$0xff]  ;;  %v1924_v28 = vld [vmem:[#allocation33_spill] sm:$0xff] }
  0xf0   :  { %761 = vmatpush.msra.mxu2 %v1334_v26  ;;  %781 = vmatpush.msra.mxu3 %v1338_v27  ;;  %v1922_v26 = vld [vmem:[#allocation24_spill] sm:$0xff]  ;;  %v1923_v27 = vld [vmem:[#allocation13_spill] sm:$0xff] }
  0xf1   :  { %722 = vmatpush.msra.mxu0 %v1320_v22  ;;  %742 = vmatpush.msrb.mxu1 %v1352_v32  ;;  %v1918_v22 = vld [vmem:[#allocation21_spill] sm:$0xff]  ;;  %v1928_v32 = vld [vmem:[#allocation34_spill] sm:$0xff] }
  0xf2   :  { %762 = vmatpush.msra.mxu2 %v1346_v30  ;;  %782 = vmatpush.msra.mxu3 %v1350_v31  ;;  %v1926_v30 = vld [vmem:[#allocation27_spill] sm:$0xff]  ;;  %v1927_v31 = vld [vmem:[#allocation16_spill] sm:$0xff] }
  0xf3   :  { %723 = vmatpush.msra.mxu0 %v1332_v25  ;;  %743 = vmatpush.msrb.mxu1 %v1377_v39  ;;  %v1921_v25 = vld [vmem:[#allocation23_spill] sm:$0xff] }
  0xf4   :  { %763 = vmatpush.msra.mxu2 %v1369_v36  ;;  %783 = vmatpush.msra.mxu3 %v1371_v37 }
  0xf5   :  { %724 = vmatpush.msra.mxu0 %v1342_v29  ;;  %744 = vmatpush.msrb.mxu1 %v1389_v43  ;;  %v1925_v29 = vld [vmem:[#allocation25_spill] sm:$0xff] }
  0xf6   :  { %764 = vmatpush.msra.mxu2 %v1381_v40  ;;  %784 = vmatpush.msra.mxu3 %v1383_v41 }
  0xf7   :  { %725 = vmatpush.msra.mxu0 %v1354_v33  ;;  %745 = vmatpush.msrb.mxu1 %v1418_v51  ;;  %v1929_v33 = vld [vmem:[#allocation28_spill] sm:$0xff] }
  0xf8   :  { %765 = vmatpush.msra.mxu2 %v1393_v44  ;;  %785 = vmatpush.msra.mxu3 %v1395_v45 }
  0xf9   :  { %726 = vmatpush.msra.mxu0 %v1363_v35  ;;  %746 = vmatpush.msrb.mxu1 %v1430_v55  ;;  %v1930_v35 = vld [vmem:[#allocation30_spill] sm:$0xff] }
  0xfa   :  { %766 = vmatpush.msra.mxu2 %v1412_v49  ;;  %786 = vmatpush.msra.mxu3 %v1414_v50 }
  0xfb   :  { %727 = vmatpush.msra.mxu0 %v1375_v38  ;;  %747 = vmatpush.msrb.mxu1 %v1444_v60  ;;  %v1931_v38 = vld [vmem:[#allocation19_spill] sm:$0xff] }
  0xfc   :  { %767 = vmatpush.msra.mxu2 %v1909_v11  ;;  %787 = vmatpush.msra.mxu3 %v1910_v13 }
  0xfd   :  { %728 = vmatpush.msra.mxu0 %v1911_v14  ;;  %748 = vmatpush.msrb.mxu1 %v1912_v15 }
  0xfe   :  { %768 = vmatpush.msra.mxu2 %v1913_v16  ;;  %788 = vmatpush.msra.mxu3 %v1914_v17 }
  0xff   :  { %729 = vmatpush.msra.mxu0 %v1915_v18  ;;  %749 = vmatpush.msrb.mxu1 %v1916_v19 }
 0x100   :  { %769 = vmatpush.msra.mxu2 %v1917_v20  ;;  %789 = vmatpush.msra.mxu3 %v1918_v22 }
 0x101   :  { %730 = vmatpush.msra.mxu0 %v1919_v23  ;;  %750 = vmatpush.msrb.mxu1 %v1920_v24 }
 0x102   :  { %770 = vmatpush.msra.mxu2 %v1921_v25  ;;  %790 = vmatpush.msra.mxu3 %v1922_v26 }
 0x103   :  { %731 = vmatpush.msra.mxu0 %v1923_v27  ;;  %751 = vmatpush.msrb.mxu1 %v1924_v28 }
 0x104   :  { %771 = vmatpush.msra.mxu2 %v1925_v29  ;;  %791 = vmatpush.msra.mxu3 %v1926_v30 }
 0x105   :  { %732 = vmatpush.msra.mxu0 %v1927_v31  ;;  %752 = vmatpush.msrb.mxu1 %v1928_v32 }
 0x106   :  { %772 = vmatpush.msra.mxu2 %v1929_v33  ;;  %792 = vmatpush.msra.mxu3 %v1930_v35 }
 0x107   :  { %733 = vmatpush.msra.mxu0 %v1931_v38  ;;  %753 = vmatpush.msrb.mxu1 %v1932_v54 }
 0x108   :  { %773 = vmatpush.msra.mxu2 %v1933_v57  ;;  %793 = vmatpush.msra.mxu3 %v1934_v63 }
 0x164   :  { %v441_v7 = vpop.f32.mrf.mxu0  ;;  %v461_v2 = vpop.f32.mrf.mxu1 }
 0x165   :  { %v504_v5 = vadd.f32 %v441_v7, %v1935_v47  ;;  %v505_v0 = vadd.f32 %v461_v2, %v1936_v42 }
 0x167   :  { %v1073_v12 = vmul.f32 -1.442695, %v504_v5  ;;  %v1074_v59 = vmul.f32 -1.442695, %v505_v0 }
 0x169   :  { %1108 = vpow2.f32 %v1073_v12 }
 0x16a   :  { %1110 = vpow2.f32 %v1074_v59 }
 0x16b   :  { %v481_v8 = vpop.f32.mrf.mxu2  ;;  %v501_v46 = vpop.f32.mrf.mxu3 }
 0x16c   :  { %v506_v6 = vadd.f32 %v481_v8, %v1937_v10  ;;  %v507_v9 = vadd.f32 %v501_v46, %v1938_v1 }
 0x16e   :  { %v1075_v21 = vmul.f32 -1.442695, %v506_v6 }
 0x16f   :  { %v1109_v34 = vpop.eup %1108 }
 0x170   :  { %v1111_v61 = vpop.eup %1110  ;;  %v517_v52 = vadd.f32 1.0, %v1109_v34  ;;  %1112 = vpow2.f32 %v1075_v21 }
 0x171   :  { %v518_v56 = vadd.f32 1.0, %v1111_v61 }
 0x172   :  { %1114 = vrcp.f32 %v517_v52  ;;  %v531_v2 = vand.u32 2147483648, %v517_v52  ;;  %v529_v42 = vand.u32 2147483647, %v517_v52  ;;  %vm525_vm15 = vweird.f32 %v517_v52 }
 0x173   :  { %1116 = vrcp.f32 %v518_v56  ;;  %v546_v47 = vand.u32 2147483648, %v518_v56  ;;  %v544_v12 = vand.u32 2147483647, %v518_v56  ;;  %vm540_vm0 = vweird.f32 %v518_v56 }
 0x174   :  { %v532_v6 = vor.u32 1.1754944e-38, %v531_v2  ;;  %vm530_vm3 = vcmp.eq.f32.partialorder %v529_v42, 8.507059e+37 }
 0x175   :  { %v547_v34 = vor.u32 1.1754944e-38, %v546_v47  ;;  %vm545_vm4 = vcmp.eq.f32.partialorder %v544_v12, 8.507059e+37  ;;  %v1173_v12 = vld [vmem:[#allocation2 + $0x228] sm:$0xff] }
 0x176   :  { %v1113_v62 = vpop.eup %1112 }
 0x177   :  { %v519_v3 = vadd.f32 1.0, %v1113_v62 }
 0x178   :  { %v1115_v48 = vpop.eup %1114 }
 0x179   :  { %v1117_v4 = vpop.eup %1116  ;;  %v521_v58 = vmul.f32 %v1115_v48, %v517_v52  ;;  %1118 = vrcp.f32 %v519_v3  ;;  %vm526_vm13 = vweird.f32 %v1115_v48  ;;  %v561_v2 = vand.u32 2147483648, %v519_v3 }
 0x17a   :  { %v536_v14 = vmul.f32 %v1117_v4, %v518_v56  ;;  %1120 = vtanh.f32 %v507_v9  ;;  %vm541_vm14 = vweird.f32 %v1117_v4  ;;  %vm527_vm1 = vmor %vm525_vm15, %vm526_vm13  ;;  %vm555_vm6 = vweird.f32 %v519_v3 }
 0x17b   :  { %v522_v18 = vsub.f32 1.0, %v521_v58  ;;  %vm542_vm2 = vmor %vm540_vm0, %vm541_vm14 }
 0x17c   :  { %v537_v7 = vsub.f32 1.0, %v536_v14 }
 0x17d   :  { %v523_v5 = vmul.f32 %v1115_v48, %v522_v18 }
 0x17e   :  { %v538_v0 = vmul.f32 %v1117_v4, %v537_v7 }
 0x17f   :  { %v1119_v59 = vpop.eup %1118  ;;  %v524_v8 = vadd.f32 %v1115_v48, %v523_v5  ;;  %v562_v5 = vor.u32 1.1754944e-38, %v561_v2  ;;  %v1191_v2 = vld [vmem:[#allocation2 + $0x1b8] sm:$0xff] }
 0x180   :  { %v551_v10 = vmul.f32 %v1119_v59, %v519_v3  ;;  %v539_v21 = vadd.f32 %v1117_v4, %v538_v0  ;;  %v1121_v46 = vpop.eup %1120  ;;  %vm556_vm5 = vweird.f32 %v1119_v59 }
 0x181   :  { %v528_v61 = vsel %vm527_vm1, %v1115_v48, %v524_v8  ;;  %v559_v48 = vand.u32 2147483647, %v519_v3  ;;  %vm557_vm7 = vmor %vm555_vm6, %vm556_vm5  ;;  %v1174_v8 = vld [vmem:[#allocation2 + $0x230] sm:$0xff]  ;;  %v1176_v3 = vld [vmem:[#allocation2 + $0x200] sm:$0xff] }
 0x182   :  { %v552_v62 = vsub.f32 1.0, %v551_v10  ;;  %v533_v1 = vsel %vm530_vm3, %v532_v6, %v528_v61  ;;  %v543_v9 = vsel %vm542_vm2, %v1117_v4, %v539_v21  ;;  %v1175_v10 = vld [vmem:[#allocation2 + $0x238] sm:$0xff]  ;;  %v1178_v6 = vld [vmem:[#allocation2 + $0x210] sm:$0xff]  ;;  %v1181_v61 = vld [vmem:[#allocation2 + $0x1e8] sm:$0xff] }
 0x183   :  { %v548_v58 = vsel %vm545_vm4, %v547_v34, %v543_v9  ;;  %v567_v14 = vmul.f32 %v1121_v46, %v533_v1  ;;  %vm560_vm8 = vcmp.eq.f32.partialorder %v559_v48, 8.507059e+37  ;;  %v1179_v21 = vld [vmem:[#allocation2 + $0x218] sm:$0xff]  ;;  %v1180_v34 = vld [vmem:[#allocation2 + $0x1e0] sm:$0xff]  ;;  %v1182_v46 = vld [vmem:[#allocation2 + $0x1f0] sm:$0xff] }
 0x184   :  { %v566_v18 = vmul.f32 %v548_v58, %v1670_v53  ;;  %v553_v7 = vmul.f32 %v1119_v59, %v552_v62  ;;  %v1172_v53 = vld [vmem:[#allocation2 + $0x220] sm:$0xff]  ;;  %v1183_v62 = vld [vmem:[#allocation2 + $0x1f8] sm:$0xff]  ;;  %v1185_v9 = vld [vmem:[#allocation2 + $0x1c8] sm:$0xff] }
 0x185   :  { %v1184_v1 = vld [vmem:[#allocation2 + $0x1c0] sm:$0xff]  ;;  %v1186_v58 = vld [vmem:[#allocation2 + $0x1d0] sm:$0xff] }
 0x186   :  { %v1742_v52 = vadd.f32 %v567_v14, %v566_v18  ;;  %v554_v56 = vadd.f32 %v1119_v59, %v553_v7  ;;  %v1187_v14 = vld [vmem:[#allocation2 + $0x1d8] sm:$0xff]  ;;  %v1188_v18 = vld [vmem:[#allocation2 + $0x1a0] sm:$0xff]  ;;  %v1189_v7 = vld [vmem:[#allocation2 + $0x1a8] sm:$0xff] }
 0x187   :  { %v1192_v48 = vld [vmem:[#allocation2 + $0x180] sm:$0xff] }
 0x188   :  { %1122 = vtanh.f32 %v1742_v52  ;;  %v558_v47 = vsel %vm557_vm7, %v1119_v59, %v554_v56  ;;  %v1177_v59 = vld [vmem:[#allocation2 + $0x208] sm:$0xff]  ;;  %v1190_v56 = vld [vmem:[#allocation2 + $0x1b0] sm:$0xff] }
 0x189   :  { %v563_v42 = vsel %vm560_vm8, %v562_v5, %v558_v47  ;;  %v1193_v47 = vld [vmem:[#allocation2 + $0x160] sm:$0xff] }
 0x18a   :  { %v1194_v5 = vld [vmem:[#allocation2 + $0x140] sm:$0xff] }
 0x18e   :  { %v1123_v4 = vpop.eup %1122 }
 0x18f   :  { %v570_v0 = vmul.f32 %v1123_v4, %v563_v42 }
 0x191   :  { %587 = vmatmul.f32.vlgmr.msrb.gmra.mxu0 %v570_v0  ;;  %607 = vmatmul.f32.vlgmr.msra.gmra.mxu1 %v570_v0 }
 0x192   :  { %627 = vmatmul.f32.vlgmr.msrb.gmra.mxu2 %v570_v0  ;;  %647 = vmatmul.f32.vlgmr.msrb.gmra.mxu3 %v570_v0 }
 0x193   :  { %865 = vmatpush.msrb.mxu0 %v1172_v53  ;;  %885 = vmatpush.msra.mxu1 %v1173_v12 }
 0x194   :  { %905 = vmatpush.msrb.mxu2 %v1174_v8  ;;  %925 = vmatpush.msrb.mxu3 %v1175_v10 }
 0x195   :  { %866 = vmatpush.msrb.mxu0 %v1176_v3  ;;  %886 = vmatpush.msra.mxu1 %v1177_v59 }
 0x196   :  { %906 = vmatpush.msrb.mxu2 %v1178_v6  ;;  %926 = vmatpush.msrb.mxu3 %v1179_v21 }
 0x197   :  { %867 = vmatpush.msrb.mxu0 %v1180_v34  ;;  %887 = vmatpush.msra.mxu1 %v1181_v61 }
 0x198   :  { %907 = vmatpush.msrb.mxu2 %v1182_v46  ;;  %927 = vmatpush.msrb.mxu3 %v1183_v62 }
 0x199   :  { %868 = vmatpush.msrb.mxu0 %v1184_v1  ;;  %888 = vmatpush.msra.mxu1 %v1185_v9 }
 0x19a   :  { %908 = vmatpush.msrb.mxu2 %v1186_v58  ;;  %928 = vmatpush.msrb.mxu3 %v1187_v14 }
 0x19b   :  { %869 = vmatpush.msrb.mxu0 %v1188_v18  ;;  %889 = vmatpush.msra.mxu1 %v1189_v7 }
 0x19c   :  { %909 = vmatpush.msrb.mxu2 %v1190_v56  ;;  %929 = vmatpush.msrb.mxu3 %v1191_v2 }
 0x19d   :  { %870 = vmatpush.msrb.mxu0 %v1192_v48  ;;  %890 = vmatpush.msra.mxu1 %v1377_v39  ;;  %v1195_v39 = vld [vmem:[#allocation2 + $0x120] sm:$0xff] }
 0x19e   :  { %910 = vmatpush.msrb.mxu2 %v1369_v36  ;;  %930 = vmatpush.msrb.mxu3 %v1371_v37  ;;  %v1196_v36 = vld [vmem:[#allocation2 + $0x100] sm:$0xff] }
 0x19f   :  { %871 = vmatpush.msrb.mxu0 %v1193_v47  ;;  %891 = vmatpush.msra.mxu1 %v1389_v43  ;;  %v1197_v37 = vld [vmem:[#allocation2 + $0xe0] sm:$0xff] }
 0x1a0   :  { %911 = vmatpush.msrb.mxu2 %v1381_v40  ;;  %931 = vmatpush.msrb.mxu3 %v1383_v41  ;;  %v1198_v40 = vld [vmem:[#allocation2 + $0xc0] sm:$0xff] }
 0x1a1   :  { %872 = vmatpush.msrb.mxu0 %v1194_v5  ;;  %892 = vmatpush.msra.mxu1 %v1418_v51  ;;  %v1943_v5 = vld [vmem:[#allocation43_spill] sm:$0xff] }
 0x1a2   :  { %912 = vmatpush.msrb.mxu2 %v1393_v44  ;;  %932 = vmatpush.msrb.mxu3 %v1395_v45  ;;  %v1939_v44 = vld [vmem:[#allocation39_spill] sm:$0xff] }
 0x1a3   :  { %873 = vmatpush.msrb.mxu0 %v1195_v39  ;;  %893 = vmatpush.msra.mxu1 %v1430_v55 }
 0x1a4   :  { %913 = vmatpush.msrb.mxu2 %v1412_v49  ;;  %933 = vmatpush.msrb.mxu3 %v1414_v50  ;;  %v1940_v49 = vld [vmem:[#allocation42_spill] sm:$0xff] }
 0x1a5   :  { %874 = vmatpush.msrb.mxu0 %v1196_v36  ;;  %894 = vmatpush.msra.mxu1 %v1444_v60  ;;  %v1944_v36 = vld [vmem:[#allocation46_spill] sm:$0xff] }
 0x1a6   :  { %914 = vmatpush.msrb.mxu2 %v1909_v11  ;;  %934 = vmatpush.msrb.mxu3 %v1910_v13  ;;  %v1941_v11 = vld [vmem:[#allocation40_spill] sm:$0xff] }
 0x1a7   :  { %875 = vmatpush.msrb.mxu0 %v1197_v37  ;;  %895 = vmatpush.msra.mxu1 %v1912_v15 }
 0x1a8   :  { %915 = vmatpush.msrb.mxu2 %v1913_v16  ;;  %935 = vmatpush.msrb.mxu3 %v1914_v17 }
 0x1a9   :  { %876 = vmatpush.msrb.mxu0 %v1198_v40  ;;  %896 = vmatpush.msra.mxu1 %v1916_v19 }
 0x1aa   :  { %916 = vmatpush.msrb.mxu2 %v1917_v20  ;;  %936 = vmatpush.msrb.mxu3 %v1918_v22 }
 0x1ab   :  { %877 = vmatpush.msrb.mxu0 %v1919_v23  ;;  %897 = vmatpush.msra.mxu1 %v1920_v24 }
 0x1ac   :  { %917 = vmatpush.msrb.mxu2 %v1921_v25  ;;  %937 = vmatpush.msrb.mxu3 %v1922_v26  ;;  %v1942_v26 = vld [vmem:[#allocation41_spill] sm:$0xff] }
 0x1ad   :  { %878 = vmatpush.msrb.mxu0 %v1923_v27  ;;  %898 = vmatpush.msra.mxu1 %v1924_v28 }
 0x1ae   :  { %918 = vmatpush.msrb.mxu2 %v1925_v29  ;;  %938 = vmatpush.msrb.mxu3 %v1926_v30 }
 0x1af   :  { %879 = vmatpush.msrb.mxu0 %v1927_v31  ;;  %899 = vmatpush.msra.mxu1 %v1928_v32 }
 0x1b0   :  { %919 = vmatpush.msrb.mxu2 %v1929_v33  ;;  %939 = vmatpush.msrb.mxu3 %v1930_v35 }
 0x1b1   :  { %880 = vmatpush.msrb.mxu0 %v1931_v38  ;;  %900 = vmatpush.msra.mxu1 %v1932_v54 }
 0x1b2   :  { %920 = vmatpush.msrb.mxu2 %v1933_v57  ;;  %940 = vmatpush.msrb.mxu3 %v1934_v63 }
 0x20e   :  { %v588_v41 = vpop.f32.mrf.mxu0  ;;  %v608_v43 = vpop.f32.mrf.mxu1 }
 0x20f   :  { %v651_v45 = vadd.f32 %v588_v41, %v1939_v44  ;;  %v652_v50 = vadd.f32 %v608_v43, %v1940_v49  ;;  %v1945_v44 = vld [vmem:[#allocation44_spill] sm:$0xff] }
 0x211   :  { %v1076_v51 = vmul.f32 -1.442695, %v651_v45  ;;  %v1077_v55 = vmul.f32 -1.442695, %v652_v50 }
 0x213   :  { %1124 = vpow2.f32 %v1076_v51 }
 0x214   :  { %1126 = vpow2.f32 %v1077_v55 }
 0x215   :  { %v628_v60 = vpop.f32.mrf.mxu2  ;;  %v648_v22 = vpop.f32.mrf.mxu3 }
 0x216   :  { %v653_v13 = vadd.f32 %v628_v60, %v1941_v11  ;;  %v654_v27 = vadd.f32 %v648_v22, %v1942_v26 }
 0x218   :  { %v1078_v15 = vmul.f32 -1.442695, %v653_v13 }
 0x219   :  { %v1125_v16 = vpop.eup %1124 }
 0x21a   :  { %v1127_v17 = vpop.eup %1126  ;;  %v664_v19 = vadd.f32 1.0, %v1125_v16  ;;  %1128 = vpow2.f32 %v1078_v15 }
 0x21b   :  { %v665_v20 = vadd.f32 1.0, %v1127_v17  ;;  %v1946_v17 = vld [vmem:[#allocation45_spill] sm:$0xff] }
 0x21c   :  { %1130 = vrcp.f32 %v664_v19  ;;  %v678_v33 = vand.u32 2147483648, %v664_v19  ;;  %v676_v54 = vand.u32 2147483647, %v664_v19  ;;  %vm672_vm11 = vweird.f32 %v664_v19 }
 0x21d   :  { %1132 = vrcp.f32 %v665_v20  ;;  %v693_v35 = vand.u32 2147483648, %v665_v20  ;;  %v691_v63 = vand.u32 2147483647, %v665_v20  ;;  %vm687_vm12 = vweird.f32 %v665_v20 }
 0x21e   :  { %v679_v53 = vor.u32 1.1754944e-38, %v678_v33  ;;  %vm677_vm15 = vcmp.eq.f32.partialorder %v676_v54, 8.507059e+37 }
 0x21f   :  { %v694_v8 = vor.u32 1.1754944e-38, %v693_v35  ;;  %vm692_vm0 = vcmp.eq.f32.partialorder %v691_v63, 8.507059e+37 }
 0x220   :  { %v1129_v23 = vpop.eup %1128 }
 0x221   :  { %v666_v24 = vadd.f32 1.0, %v1129_v23 }
 0x222   :  { %v1131_v25 = vpop.eup %1130 }
 0x223   :  { %v1133_v28 = vpop.eup %1132  ;;  %v668_v29 = vmul.f32 %v1131_v25, %v664_v19  ;;  %1134 = vrcp.f32 %v666_v24  ;;  %vm673_vm9 = vweird.f32 %v1131_v25  ;;  %v708_v58 = vand.u32 2147483648, %v666_v24 }
 0x224   :  { %v683_v30 = vmul.f32 %v1133_v28, %v665_v20  ;;  %1136 = vtanh.f32 %v654_v27  ;;  %vm688_vm10 = vweird.f32 %v1133_v28  ;;  %vm674_vm13 = vmor %vm672_vm11, %vm673_vm9  ;;  %vm702_vm2 = vweird.f32 %v666_v24 }
 0x225   :  { %v669_v31 = vsub.f32 1.0, %v668_v29  ;;  %vm689_vm14 = vmor %vm687_vm12, %vm688_vm10  ;;  %v706_v14 = vand.u32 2147483647, %v666_v24  ;;  %v709_v7 = vor.u32 1.1754944e-38, %v708_v58 }
 0x226   :  { %v684_v32 = vsub.f32 1.0, %v683_v30 }
 0x227   :  { %v670_v38 = vmul.f32 %v1131_v25, %v669_v31  ;;  %vm707_vm4 = vcmp.eq.f32.partialorder %v706_v14, 8.507059e+37  ;;  %v116_v14 = vld [vmem:[#allocation2 + $0x420] sm:$0xff] }
 0x228   :  { %v685_v57 = vmul.f32 %v1133_v28, %v684_v32 }
 0x229   :  { %v1135_v4 = vpop.eup %1134  ;;  %v671_v42 = vadd.f32 %v1131_v25, %v670_v38 }
 0x22a   :  { %v698_v0 = vmul.f32 %v1135_v4, %v666_v24  ;;  %v686_v12 = vadd.f32 %v1133_v28, %v685_v57  ;;  %v1137_v3 = vpop.eup %1136  ;;  %vm703_vm1 = vweird.f32 %v1135_v4 }
 0x22b   :  { %v675_v10 = vsel %vm674_vm13, %v1131_v25, %v671_v42  ;;  %vm704_vm3 = vmor %vm702_vm2, %vm703_vm1 }
 0x22c   :  { %v699_v59 = vsub.f32 1.0, %v698_v0  ;;  %v680_v6 = vsel %vm677_vm15, %v679_v53, %v675_v10  ;;  %v690_v21 = vsel %vm689_vm14, %v1133_v28, %v686_v12 }
 0x22d   :  { %v695_v34 = vsel %vm692_vm0, %v694_v8, %v690_v21  ;;  %v714_v61 = vmul.f32 %v1137_v3, %v680_v6 }
 0x22e   :  { %v713_v46 = vmul.f32 %v695_v34, %v1742_v52  ;;  %v700_v62 = vmul.f32 %v1135_v4, %v699_v59 }
 0x230   :  { %v1787_v1 = vadd.f32 %v714_v61, %v713_v46  ;;  %v701_v9 = vadd.f32 %v1135_v4, %v700_v62 }
 0x232   :  { %1138 = vtanh.f32 %v1787_v1  ;;  %v705_v18 = vsel %vm704_vm3, %v1135_v4, %v701_v9 }
 0x233   :  { %v710_v2 = vsel %vm707_vm4, %v709_v7, %v705_v18  ;;  %v115_v18 = vld [vmem:[#allocation2 + $0x400] sm:$0xff] }
 0x234   :  { %v114_v7 = vld [vmem:[#allocation2 + $0x3e0] sm:$0xff] }
 0x238   :  { %v1139_v56 = vpop.eup %1138 }
 0x239   :  { %v717_v48 = vmul.f32 %v1139_v56, %v710_v2  ;;  %v113_v56 = vld [vmem:[#allocation2 + $0x3c0] sm:$0xff] }
 0x23a   :  { %v112_v2 = vld [vmem:[#allocation2 + $0x3a0] sm:$0xff] }
 0x23b   :  { %734 = vmatmul.f32.vlgmr.msra.gmra.mxu0 %v717_v48  ;;  %754 = vmatmul.f32.vlgmr.msrb.gmra.mxu1 %v717_v48 }
 0x23c   :  { %774 = vmatmul.f32.vlgmr.msra.gmra.mxu2 %v717_v48  ;;  %794 = vmatmul.f32.vlgmr.msra.gmra.mxu3 %v717_v48  ;;  %v111_v48 = vld [vmem:[#allocation2 + $0x380] sm:$0xff] }
 0x2b8   :  { %v735_v52 = vpop.f32.mrf.mxu0  ;;  %v755_v47 = vpop.f32.mrf.mxu1 }
 0x2b9   :  { %v798_v39 = vadd.f32 %v735_v52, %v1943_v5  ;;  %v799_v37 = vadd.f32 %v755_v47, %v1944_v36  ;;  %v110_v52 = vld [vmem:[#allocation2 + $0x360] sm:$0xff] }
 0x2ba   :  { %v109_v47 = vld [vmem:[#allocation2 + $0x340] sm:$0xff] }
 0x2bb   :  { %v1079_v40 = vmul.f32 -1.442695, %v798_v39  ;;  %v1080_v41 = vmul.f32 -1.442695, %v799_v37  ;;  %v108_v5 = vld [vmem:[#allocation2 + $0x320] sm:$0xff]  ;;  %v1947_v37 = vld [vmem:[#allocation8_spill] sm:$0xff] }
 0x2bd   :  { %1140 = vpow2.f32 %v1079_v40 }
 0x2be   :  { %1142 = vpow2.f32 %v1080_v41  ;;  %v1948_v41 = vld [vmem:[#allocation49_spill] sm:$0xff] }
 0x2bf   :  { %v775_v43 = vpop.f32.mrf.mxu2  ;;  %v795_v11 = vpop.f32.mrf.mxu3 }
 0x2c0   :  { %v800_v45 = vadd.f32 %v775_v43, %v1945_v44  ;;  %v801_v19 = vadd.f32 %v795_v11, %v1946_v17  ;;  %v107_v44 = vld [vmem:[#allocation2 + $0x300] sm:$0xff] }
 0x2c1   :  { %v103_v11 = vld [vmem:[#allocation2 + $0x280] sm:$0xff] }
 0x2c2   :  { %v1081_v49 = vmul.f32 -1.442695, %v800_v45 }
 0x2c3   :  { %v1141_v50 = vpop.eup %1140 }
 0x2c4   :  { %v1143_v51 = vpop.eup %1142  ;;  %v811_v55 = vadd.f32 1.0, %v1141_v50  ;;  %1144 = vpow2.f32 %v1081_v49  ;;  %v106_v50 = vld [vmem:[#allocation2 + $0x2e0] sm:$0xff] }
 0x2c5   :  { %v812_v60 = vadd.f32 1.0, %v1143_v51  ;;  %v105_v51 = vld [vmem:[#allocation2 + $0x2c0] sm:$0xff] }
 0x2c6   :  { %1146 = vrcp.f32 %v811_v55  ;;  %v825_v26 = vand.u32 2147483648, %v811_v55  ;;  %v823_v29 = vand.u32 2147483647, %v811_v55  ;;  %vm819_vm7 = vweird.f32 %v811_v55 }
 0x2c7   :  { %1148 = vrcp.f32 %v812_v60  ;;  %v840_v27 = vand.u32 2147483648, %v812_v60  ;;  %v838_v31 = vand.u32 2147483647, %v812_v60  ;;  %vm834_vm8 = vweird.f32 %v812_v60 }
 0x2c8   :  { %v826_v38 = vor.u32 1.1754944e-38, %v825_v26  ;;  %vm824_vm11 = vcmp.eq.f32.partialorder %v823_v29, 8.507059e+37 }
 0x2c9   :  { %v841_v57 = vor.u32 1.1754944e-38, %v840_v27  ;;  %vm839_vm12 = vcmp.eq.f32.partialorder %v838_v31, 8.507059e+37 }
 0x2ca   :  { %v1145_v13 = vpop.eup %1144 }
 0x2cb   :  { %v813_v15 = vadd.f32 1.0, %v1145_v13  ;;  %v1949_v13 = vld [vmem:[#allocation47_spill] sm:$0xff] }
 0x2cc   :  { %v1147_v16 = vpop.eup %1146 }
 0x2cd   :  { %v1149_v20 = vpop.eup %1148  ;;  %v815_v22 = vmul.f32 %v1147_v16, %v811_v55  ;;  %1150 = vrcp.f32 %v813_v15  ;;  %vm820_vm5 = vweird.f32 %v1147_v16  ;;  %v855_v21 = vand.u32 2147483648, %v813_v15  ;;  %v104_v55 = vld [vmem:[#allocation2 + $0x2a0] sm:$0xff] }
 0x2ce   :  { %v830_v23 = vmul.f32 %v1149_v20, %v812_v60  ;;  %1152 = vtanh.f32 %v801_v19  ;;  %vm835_vm6 = vweird.f32 %v1149_v20  ;;  %vm821_vm9 = vmor %vm819_vm7, %vm820_vm5  ;;  %vm849_vm14 = vweird.f32 %v813_v15 }
 0x2cf   :  { %v816_v24 = vsub.f32 1.0, %v815_v22  ;;  %vm836_vm10 = vmor %vm834_vm8, %vm835_vm6  ;;  %v853_v34 = vand.u32 2147483647, %v813_v15  ;;  %v856_v46 = vor.u32 1.1754944e-38, %v855_v21 }
 0x2d0   :  { %v831_v25 = vsub.f32 1.0, %v830_v23 }
 0x2d1   :  { %v817_v28 = vmul.f32 %v1147_v16, %v816_v24  ;;  %vm854_vm0 = vcmp.eq.f32.partialorder %v853_v34, 8.507059e+37 }
 0x2d2   :  { %v832_v30 = vmul.f32 %v1149_v20, %v831_v25 }
 0x2d3   :  { %v1151_v32 = vpop.eup %1150  ;;  %v818_v33 = vadd.f32 %v1147_v16, %v817_v28  ;;  %v1950_v28 = vld [vmem:[#allocation48_spill] sm:$0xff] }
 0x2d4   :  { %v845_v35 = vmul.f32 %v1151_v32, %v813_v15  ;;  %v833_v54 = vadd.f32 %v1149_v20, %v832_v30  ;;  %v1153_v4 = vpop.eup %1152  ;;  %vm850_vm13 = vweird.f32 %v1151_v32 }
 0x2d5   :  { %v822_v63 = vsel %vm821_vm9, %v1147_v16, %v818_v33  ;;  %vm851_vm15 = vmor %vm849_vm14, %vm850_vm13  ;;  %v102_v16 = vld [vmem:[#allocation2 + $0x260] sm:$0xff] }
 0x2d6   :  { %v846_v42 = vsub.f32 1.0, %v845_v35  ;;  %v827_v0 = vsel %vm824_vm11, %v826_v38, %v822_v63  ;;  %v837_v53 = vsel %vm836_vm10, %v1149_v20, %v833_v54 }
 0x2d7   :  { %v842_v12 = vsel %vm839_vm12, %v841_v57, %v837_v53  ;;  %v861_v8 = vmul.f32 %v1153_v4, %v827_v0 }
 0x2d8   :  { %v860_v10 = vmul.f32 %v842_v12, %v1787_v1  ;;  %v847_v3 = vmul.f32 %v1151_v32, %v846_v42  ;;  %v117_v1 = vld [vmem:[#allocation2 + $0x440] sm:$0xff] }
 0x2d9   :  { %1012 = vmatpush.msra.mxu0 %v117_v1 }
 0x2da   :  { %v1795_v59 = vadd.f32 %v861_v8, %v860_v10  ;;  %v848_v6 = vadd.f32 %v1151_v32, %v847_v3 }
 0x2db   :  { %1013 = vmatpush.msra.mxu0 %v116_v14 }
 0x2dc   :  { %1154 = vtanh.f32 %v1795_v59  ;;  %v852_v61 = vsel %vm851_vm15, %v1151_v32, %v848_v6 }
 0x2dd   :  { %v857_v9 = vsel %vm854_vm0, %v856_v46, %v852_v61  ;;  %1014 = vmatpush.msra.mxu0 %v115_v18 }
 0x2df   :  { %1015 = vmatpush.msra.mxu0 %v114_v7 }
 0x2e1   :  { %1016 = vmatpush.msra.mxu0 %v113_v56 }
 0x2e2   :  { %v1155_v62 = vpop.eup %1154 }
 0x2e3   :  { %v864_v58 = vmul.f32 %v1155_v62, %v857_v9  ;;  %1017 = vmatpush.msra.mxu0 %v112_v2 }
 0x2e5   :  { %881 = vmatmul.f32.vlgmr.msrb.gmra.mxu0 %v864_v58  ;;  %901 = vmatmul.f32.vlgmr.msra.gmra.mxu1 %v864_v58 }
 0x2e6   :  { %921 = vmatmul.f32.vlgmr.msrb.gmra.mxu2 %v864_v58  ;;  %941 = vmatmul.f32.vlgmr.msrb.gmra.mxu3 %v864_v58 }
 0x2e7   :  { %1018 = vmatpush.msra.mxu0 %v111_v48 }
 0x2e9   :  { %1019 = vmatpush.msra.mxu0 %v110_v52 }
 0x2eb   :  { %1020 = vmatpush.msra.mxu0 %v109_v47 }
 0x2ed   :  { %1021 = vmatpush.msra.mxu0 %v108_v5 }
 0x2ef   :  { %1022 = vmatpush.msra.mxu0 %v107_v44 }
 0x2f1   :  { %1023 = vmatpush.msra.mxu0 %v106_v50 }
 0x2f3   :  { %1024 = vmatpush.msra.mxu0 %v105_v51 }
 0x2f5   :  { %1025 = vmatpush.msra.mxu0 %v104_v55 }
 0x2f7   :  { %1026 = vmatpush.msra.mxu0 %v103_v11 }
 0x2f9   :  { %1027 = vmatpush.msra.mxu0 %v102_v16 }
 0x362   :  { %v882_v39 = vpop.f32.mrf.mxu0  ;;  %v902_v36 = vpop.f32.mrf.mxu1 }
 0x363   :  { %v945_v40 = vadd.f32 %v882_v39, %v1947_v37  ;;  %v946_v43 = vadd.f32 %v902_v36, %v1948_v41  ;;  %v118_v39 = vld [vmem:[#allocation2 + $0x460] ss:$0 sm:$0xff] }
 0x365   :  { %v1082_v45 = vmul.f32 -1.442695, %v945_v40  ;;  %v1083_v49 = vmul.f32 -1.442695, %v946_v43 }
 0x367   :  { %1156 = vpow2.f32 %v1082_v45 }
 0x368   :  { %1158 = vpow2.f32 %v1083_v49 }
 0x369   :  { %v922_v60 = vpop.f32.mrf.mxu2  ;;  %v942_v24 = vpop.f32.mrf.mxu3 }
 0x36a   :  { %v947_v15 = vadd.f32 %v922_v60, %v1949_v13  ;;  %v948_v29 = vadd.f32 %v942_v24, %v1950_v28 }
 0x36c   :  { %v1084_v17 = vmul.f32 -1.442695, %v947_v15 }
 0x36d   :  { %v1157_v19 = vpop.eup %1156 }
 0x36e   :  { %v1159_v20 = vpop.eup %1158  ;;  %v958_v22 = vadd.f32 1.0, %v1157_v19  ;;  %1160 = vpow2.f32 %v1084_v17 }
 0x36f   :  { %v959_v23 = vadd.f32 1.0, %v1159_v20 }
 0x370   :  { %1162 = vrcp.f32 %v958_v22  ;;  %v972_v38 = vand.u32 2147483648, %v958_v22  ;;  %v970_v63 = vand.u32 2147483647, %v958_v22  ;;  %vm966_vm3 = vweird.f32 %v958_v22 }
 0x371   :  { %1164 = vrcp.f32 %v959_v23  ;;  %v987_v54 = vand.u32 2147483648, %v959_v23  ;;  %v985_v42 = vand.u32 2147483647, %v959_v23  ;;  %vm981_vm4 = vweird.f32 %v959_v23 }
 0x372   :  { %v973_v8 = vor.u32 1.1754944e-38, %v972_v38  ;;  %vm971_vm7 = vcmp.eq.f32.partialorder %v970_v63, 8.507059e+37 }
 0x373   :  { %v988_v3 = vor.u32 1.1754944e-38, %v987_v54  ;;  %vm986_vm8 = vcmp.eq.f32.partialorder %v985_v42, 8.507059e+37 }
 0x374   :  { %v1161_v25 = vpop.eup %1160 }
 0x375   :  { %v960_v26 = vadd.f32 1.0, %v1161_v25 }
 0x376   :  { %v1163_v27 = vpop.eup %1162 }
 0x377   :  { %v1165_v30 = vpop.eup %1164  ;;  %v962_v31 = vmul.f32 %v1163_v27, %v958_v22  ;;  %1166 = vrcp.f32 %v960_v26  ;;  %vm967_vm1 = vweird.f32 %v1163_v27  ;;  %v1002_v7 = vand.u32 2147483648, %v960_v26 }
 0x378   :  { %v977_v32 = vmul.f32 %v1165_v30, %v959_v23  ;;  %1168 = vtanh.f32 %v948_v29  ;;  %vm982_vm2 = vweird.f32 %v1165_v30  ;;  %vm968_vm5 = vmor %vm966_vm3, %vm967_vm1  ;;  %vm996_vm10 = vweird.f32 %v960_v26 }
 0x379   :  { %v963_v33 = vsub.f32 1.0, %v962_v31  ;;  %vm983_vm6 = vmor %vm981_vm4, %vm982_vm2  ;;  %v1000_v56 = vand.u32 2147483647, %v960_v26  ;;  %v1003_v48 = vor.u32 1.1754944e-38, %v1002_v7 }
 0x37a   :  { %v978_v35 = vsub.f32 1.0, %v977_v32 }
 0x37b   :  { %v964_v57 = vmul.f32 %v1163_v27, %v963_v33  ;;  %vm1001_vm12 = vcmp.eq.f32.partialorder %v1000_v56, 8.507059e+37 }
 0x37c   :  { %v979_v4 = vmul.f32 %v1165_v30, %v978_v35 }
 0x37d   :  { %v1167_v0 = vpop.eup %1166  ;;  %v965_v53 = vadd.f32 %v1163_v27, %v964_v57 }
 0x37e   :  { %v992_v12 = vmul.f32 %v1167_v0, %v960_v26  ;;  %v980_v10 = vadd.f32 %v1165_v30, %v979_v4  ;;  %v1169_v21 = vpop.eup %1168  ;;  %vm997_vm9 = vweird.f32 %v1167_v0 }
 0x37f   :  { %v969_v6 = vsel %vm968_vm5, %v1163_v27, %v965_v53  ;;  %vm998_vm11 = vmor %vm996_vm10, %vm997_vm9 }
 0x380   :  { %v993_v34 = vsub.f32 1.0, %v992_v12  ;;  %v974_v61 = vsel %vm971_vm7, %v973_v8, %v969_v6  ;;  %v984_v46 = vsel %vm983_vm6, %v1165_v30, %v980_v10 }
 0x381   :  { %v989_v62 = vsel %vm986_vm8, %v988_v3, %v984_v46  ;;  %v1008_v9 = vmul.f32 %v1169_v21, %v974_v61 }
 0x382   :  { %v1007_v58 = vmul.f32 %v989_v62, %v1795_v59  ;;  %v994_v1 = vmul.f32 %v1167_v0, %v993_v34 }
 0x384   :  { %v1009_v14 = vadd.f32 %v1008_v9, %v1007_v58  ;;  %v995_v18 = vadd.f32 %v1167_v0, %v994_v1 }
 0x386   :  { %1170 = vtanh.f32 %v1009_v14  ;;  %v999_v2 = vsel %vm998_vm11, %v1167_v0, %v995_v18 }
 0x387   :  { %v1004_v47 = vsel %vm1001_vm12, %v1003_v48, %v999_v2 }
 0x38c   :  { %v1171_v52 = vpop.eup %1170 }
 0x38d   :  { %v1011_v5 = vmul.f32 %v1171_v52, %v1004_v47 }
 0x38f   :  { %1028 = vmatmul.f32.vlgmr.msra.gmra.mxu0 %v1011_v5 }
 0x40c   :  { %v1029_v59 = vpop.f32.mrf.mxu0 }
 0x40d   :  { %v1030_v36 = vadd.f32 %v1029_v59, %v118_v39 }
 0x40f   :  { %1032 = vst [vmem:[#allocation5] sm:$0xff] %v1030_v36 }
 0x410   :  { %1043 = dma.vmem_to_hbm [thread:$0]  %s1039_s25, 128, %s1041_s28, [#allocation4]  }
 0x411   :  { %1249 = dma.done.wait [#allocation4], 128  }
 0x412   :  { %1250 = vsyncadd [#allocation4], 4294967168 }
 0x413   :  { %1048 = vsyncpa [#allocation3], 1 }
 0x414   :  { %1049 = vsyncpa [#allocation4], 1 }

</bundles_post_ra>
